<compile_context>
chip_gen: v7x
topology: tpu7x:2x2x1
jax: 0.10.0
libtpu: 0.0.40
codegen_flags: <defaults>
</compile_context>

<pallas_src>
import functools

import jax
import jax.numpy as jnp
from jax import lax
from jax.experimental import pallas as pl
from jax.experimental.pallas import tpu as pltpu


# ---------------------------------------------------------------------------
# Fused kernel: num_layers x LSTM (wavefront over (layer, time)) + Linear/ReLU/
# Linear/Sigmoid classifier.  Grid-less; everything VMEM-resident, state in vregs.
# ---------------------------------------------------------------------------
def _make_fused_kernel(num_layers, seq_len, hidden_dim, input_dim):
    T, H, L, D = seq_len, hidden_dim, num_layers, input_dim

    def kernel(*refs):
        # ---- unpack refs ---------------------------------------------------
        x_ref = refs[0]                                     # (T, B, D) f32
        idx = 1
        w_ih0_ref, w_hh0_ref, b0_ref = refs[idx:idx + 3]    # (D,4H) bf16, (H,4H) bf16, (1,4H) f32
        idx += 3
        deep_refs = []                                      # layers 1..L-1
        for _ in range(1, L):
            deep_refs.append((refs[idx], refs[idx + 1], refs[idx + 2]))
            idx += 3                                        # (H,4H) bf16, (H,4H) bf16, (1,4H) f32
        cw1_ref, cb1_ref, cw2_ref, cb2_ref = refs[idx:idx + 4]
        idx += 4
        out_ref = refs[idx]                                 # (B, 1) f32

        B = x_ref.shape[1]
        mm_dtype = w_hh0_ref.dtype

        # g-gate column mask (PyTorch gate order i, f, g, o) — built once, reused
        # by every cell (no per-cell broadcast).
        col = lax.broadcasted_iota(jnp.int32, (B, 4 * H), 1)
        g_mask = (col >= 2 * H) & (col < 3 * H)
        pre_scale = jnp.where(g_mask, jnp.float32(1.0), jnp.float32(0.5))

        def lstm_cell(gates, c_prev):
            # One EUP pass for all four gates:
            #   sigmoid(x) = 0.5 * (1 + tanh(x / 2))  ->  tanh on g columns,
            #   sigmoid elsewhere, from a single jnp.tanh over (B, 4H).
            y = jnp.tanh(gates * pre_scale)
            act = jnp.where(g_mask, y, 0.5 * y + 0.5)
            i_g = act[:, 0 * H:1 * H]
            f_g = act[:, 1 * H:2 * H]
            g_g = act[:, 2 * H:3 * H]
            o_g = act[:, 3 * H:4 * H]
            c_new = f_g * c_prev + i_g * g_g
            h_new = o_g * jnp.tanh(c_new)
            return h_new, c_new

        # Hoisted layer-0 input projection (+bias): one matmul for the whole
        # sequence; the recurrence only adds h @ W_hh per step.  Kept as a value
        # (8 vregs), sliced statically — no VMEM staging.
        x_all = x_ref[...].reshape(T * B, D).astype(mm_dtype)
        xw0 = jnp.dot(x_all, w_ih0_ref[...],
                      preferred_element_type=jnp.float32) + b0_ref[...]   # (T*B, 4H) f32

        zeros_f32 = jnp.zeros((B, H), jnp.float32)
        zeros_mm = jnp.zeros((B, H), mm_dtype)
        c = [zeros_f32] * L          # f32 cell state per layer
        h_mm = [zeros_mm] * L        # bf16 hidden per layer (MXU operand)
        below = [None] * L           # below[l]: h_t of layer l-1 (bf16), produced last round
        h_top = zeros_f32            # f32 hidden of the top layer (classifier input)

        # Wavefront: round r processes every cell (l, t) with l + t == r.
        # Dependence depth = L + T - 1 rounds (vs L*T fully-serialized steps).
        for r in range(L + T - 1):
            new_below = list(below)
            for l in range(max(0, r - (T - 1)), min(L, r + 1)):
                t = r - l
                if l == 0:
                    gates = xw0[t * B:(t + 1) * B, :]
                    if t > 0:        # h == 0 at t == 0: skip the zero matmul
                        gates = gates + jnp.dot(h_mm[0], w_hh0_ref[...],
                                                preferred_element_type=jnp.float32)
                else:
                    w_ih_ref, w_hh_ref, b_ref = deep_refs[l - 1]
                    # Two independent K=32 matmuls (same wavefront round -> they
                    # overlap); avoids a lane-offset concat on the critical path.
                    gates = jnp.dot(below[l], w_ih_ref[...],
                                    preferred_element_type=jnp.float32) + b_ref[...]
                    if t > 0:
                        gates = gates + jnp.dot(h_mm[l], w_hh_ref[...],
                                                preferred_element_type=jnp.float32)
                h_new, c_new = lstm_cell(gates, c[l])
                c[l] = c_new
                h_bf = h_new.astype(mm_dtype)   # single cast, reused by both MXU consumers
                h_mm[l] = h_bf
                if l + 1 < L:
                    new_below[l + 1] = h_bf
                if l == L - 1:
                    h_top = h_new
            below = new_below

        # Classifier head on h_{T-1} of the top layer (dropouts identity in eval).
        z1 = jnp.dot(h_top.astype(cw1_ref.dtype), cw1_ref[...],
                     preferred_element_type=jnp.float32) + cb1_ref[...]
        a1 = jnp.maximum(z1, 0.0)
        # (B, H/2) x (H/2, 1) done as VPU multiply + lane reduction (XLU), not MXU.
        z2 = jnp.sum(a1 * cw2_ref[...], axis=-1, keepdims=True) + cb2_ref[...]
        out_ref[...] = jax.nn.sigmoid(z2)

    return kernel


# ---------------------------------------------------------------------------
# Wrapper
# ---------------------------------------------------------------------------
def lstm_discriminator_forward(x, params, hidden_dim, num_layers):
    # x: (B, T, input_dim) batch-first, as in the PyTorch module.
    B, T, D = x.shape
    B_pad = ((B + 7) // 8) * 8                      # sublane multiple
    x_tm = jnp.transpose(x, (1, 0, 2)).astype(jnp.float32)   # (T, B, D)
    if B_pad != B:
        x_tm = jnp.pad(x_tm, ((0, 0), (0, B_pad - B), (0, 0)))

    args = [x_tm]
    for l in range(num_layers):
        p = params[f"lstm_{l}"]
        args += [p["w_ih_t"], p["w_hh_t"], p["b"]]
    cp = params["classifier"]
    args += [cp["w1_t"], cp["b1"], cp["w2_row"], cp["b2"]]

    # Whole problem is VMEM-resident (grid-less, no scratch): guard against the
    # scoped VMEM limit we explicitly request (same number on v5e / v6e / v7x).
    vmem_limit = 32 * 1024 * 1024
    footprint = sum(int(a.size) * a.dtype.itemsize for a in args) + B_pad * 4
    assert footprint < vmem_limit // 2, (
        f"VMEM footprint {footprint} B too large for the requested {vmem_limit} B "
        f"scoped limit; tile the (T, B, .) sequence axis.")

    out = pl.pallas_call(
        _make_fused_kernel(num_layers, T, hidden_dim, D),
        out_shape=jax.ShapeDtypeStruct((B_pad, 1), jnp.float32),
        in_specs=[pl.BlockSpec(memory_space=pltpu.MemorySpace.VMEM)] * len(args),
        out_specs=pl.BlockSpec(memory_space=pltpu.MemorySpace.VMEM),
        compiler_params=pltpu.CompilerParams(vmem_limit_bytes=vmem_limit),
    )(*args)
    return out[:B]


# ---------------------------------------------------------------------------
# Parameter init (PyTorch-style uniform(-1/sqrt(H), 1/sqrt(H)));
# matmul weights stored bf16 (MXU operands), biases / reduction row / state f32.
# ---------------------------------------------------------------------------
def init_params(key, input_dim, hidden_dim, num_layers, matmul_dtype=jnp.bfloat16):
    params = {}
    k = 1.0 / jnp.sqrt(jnp.float32(hidden_dim))
    keys = jax.random.split(key, num_layers * 4 + 4)
    ki = 0

    def unif(kk, shape):
        return jax.random.uniform(kk, shape, jnp.float32, minval=-k, maxval=k)

    for layer in range(num_layers):
        in_dim = input_dim if layer == 0 else hidden_dim
        w_ih = unif(keys[ki], (4 * hidden_dim, in_dim)); ki += 1       # (4H, D_l)
        w_hh = unif(keys[ki], (4 * hidden_dim, hidden_dim)); ki += 1   # (4H, H)
        b_ih = unif(keys[ki], (4 * hidden_dim,)); ki += 1
        b_hh = unif(keys[ki], (4 * hidden_dim,)); ki += 1
        params[f"lstm_{layer}"] = {
            "w_ih_t": jnp.transpose(w_ih).astype(matmul_dtype),        # (D_l, 4H)
            "w_hh_t": jnp.transpose(w_hh).astype(matmul_dtype),        # (H, 4H)
            "b": (b_ih + b_hh).reshape(1, 4 * hidden_dim),             # (1, 4H) f32
        }

    h2 = hidden_dim // 2
    w1 = unif(keys[ki], (h2, hidden_dim)); ki += 1
    b1 = unif(keys[ki], (h2,)); ki += 1
    w2 = unif(keys[ki], (1, h2)); ki += 1
    b2 = unif(keys[ki], (1,)); ki += 1
    params["classifier"] = {
        "w1_t": jnp.transpose(w1).astype(matmul_dtype),   # (H, H/2) bf16
        "b1": b1.reshape(1, h2),                          # (1, H/2) f32
        "w2_row": w2.reshape(1, h2),                      # (1, H/2) f32 (VPU reduction operand)
        "b2": b2.reshape(1, 1),                           # (1, 1)  f32
    }
    return params


# ---------------------------------------------------------------------------
# Pure-JAX f32 reference (matches PyTorch nn.LSTM / classifier eval semantics)
# ---------------------------------------------------------------------------
def reference_forward(x, params, hidden_dim, num_layers):
    B, T, _ = x.shape
    H = hidden_dim
    h_seq = jnp.transpose(x, (1, 0, 2)).astype(jnp.float32)
    for l in range(num_layers):
        p = params[f"lstm_{l}"]
        w_ih = p["w_ih_t"].astype(jnp.float32)
        w_hh = p["w_hh_t"].astype(jnp.float32)
        b = p["b"]
        h = jnp.zeros((B, H), jnp.float32)
        c = jnp.zeros((B, H), jnp.float32)
        outs = []
        for t in range(T):
            gates = h_seq[t] @ w_ih + h @ w_hh + b
            i = jax.nn.sigmoid(gates[:, 0 * H:1 * H])
            f = jax.nn.sigmoid(gates[:, 1 * H:2 * H])
            g = jnp.tanh(gates[:, 2 * H:3 * H])
            o = jax.nn.sigmoid(gates[:, 3 * H:4 * H])
            c = f * c + i * g
            h = o * jnp.tanh(c)
            outs.append(h)
        h_seq = jnp.stack(outs, axis=0)
    cp = params["classifier"]
    z1 = h_seq[-1] @ cp["w1_t"].astype(jnp.float32) + cp["b1"]
    a1 = jnp.maximum(z1, 0.0)
    z2 = a1 @ jnp.transpose(cp["w2_row"]) + cp["b2"]
    return jax.nn.sigmoid(z2)


if __name__ == "__main__":
    input_dim = 4
    hidden_dim = 32
    num_layers = 3
    batch = 4
    seq_len = 8

    key = jax.random.PRNGKey(0)
    kx, kp = jax.random.split(key)
    x = jax.random.normal(kx, (batch, seq_len, input_dim), dtype=jnp.float32)
    params = init_params(kp, input_dim, hidden_dim, num_layers)

    fwd = jax.jit(functools.partial(
        lstm_discriminator_forward, hidden_dim=hidden_dim, num_layers=num_layers))
    out = jax.block_until_ready(fwd(x, params))

    assert out.shape == (batch, 1), out.shape
    assert bool(jnp.all((out >= 0.0) & (out <= 1.0))), "sigmoid output out of range"

    ref = reference_forward(x, params, hidden_dim, num_layers)
    assert bool(jnp.allclose(out, ref, atol=2e-2, rtol=2e-2)), (out, ref)
    print("KERNEL_OK")
</pallas_src>

<mosaic_0001>
module attributes {stable_mosaic.version = 11 : i64} {
  func.func @kernel(%arg0: memref<8x8x4xf32, #tpu.memory_space<vmem>>, %arg1: memref<4x128xbf16, #tpu.memory_space<vmem>>, %arg2: memref<32x128xbf16, #tpu.memory_space<vmem>>, %arg3: memref<1x128xf32, #tpu.memory_space<vmem>>, %arg4: memref<32x128xbf16, #tpu.memory_space<vmem>>, %arg5: memref<32x128xbf16, #tpu.memory_space<vmem>>, %arg6: memref<1x128xf32, #tpu.memory_space<vmem>>, %arg7: memref<32x128xbf16, #tpu.memory_space<vmem>>, %arg8: memref<32x128xbf16, #tpu.memory_space<vmem>>, %arg9: memref<1x128xf32, #tpu.memory_space<vmem>>, %arg10: memref<32x16xbf16, #tpu.memory_space<vmem>>, %arg11: memref<1x16xf32, #tpu.memory_space<vmem>>, %arg12: memref<1x16xf32, #tpu.memory_space<vmem>>, %arg13: memref<1x1xf32, #tpu.memory_space<vmem>>, %arg14: memref<8x1xf32, #tpu.memory_space<vmem>>) attributes {dimension_semantics = [], scalar_prefetch = 0 : i64, scratch_operands = 0 : i64, tpu.core_type = #tpu.core_type<tc>} {
    %0 = tpu.iota {dimensions = array<i32: 1>} : vector<8x128xi32>
    %c64_i32 = arith.constant 64 : i32
    %1 = vector.broadcast %c64_i32 : i32 to vector<8x128xi32>
    %2 = arith.cmpi sge, %0, %1 : vector<8x128xi32>
    %c96_i32 = arith.constant 96 : i32
    %3 = vector.broadcast %c96_i32 : i32 to vector<8x128xi32>
    %4 = arith.cmpi slt, %0, %3 : vector<8x128xi32>
    %5 = arith.andi %2, %4 : vector<8x128xi1>
    %cst = arith.constant 1.000000e+00 : f32
    %cst_0 = arith.constant 5.000000e-01 : f32
    %6 = vector.broadcast %cst : f32 to vector<8x128xf32>
    %7 = vector.broadcast %cst_0 : f32 to vector<8x128xf32>
    %8 = arith.select %5, %6, %7 : vector<8x128xi1>, vector<8x128xf32>
    %c0 = arith.constant 0 : index
    %c0_1 = arith.constant 0 : index
    %c0_2 = arith.constant 0 : index
    %9 = vector.load %arg0[%c0, %c0_1, %c0_2] : memref<8x8x4xf32, #tpu.memory_space<vmem>>, vector<8x8x4xf32>
    %10 = vector.shape_cast %9 : vector<8x8x4xf32> to vector<64x4xf32>
    %11 = arith.truncf %10 : vector<64x4xf32> to vector<64x4xbf16>
    %c0_3 = arith.constant 0 : index
    %c0_4 = arith.constant 0 : index
    %12 = vector.load %arg1[%c0_3, %c0_4] : memref<4x128xbf16, #tpu.memory_space<vmem>>, vector<4x128xbf16>
    %cst_5 = arith.constant dense<0.000000e+00> : vector<64x128xf32>
    %13 = tpu.matmul %11, %12, %cst_5 {dimension_numbers = #tpu.dot_dimension_numbers<[1], [0], [0], [1], [0, 0, 1, 1], [], []>} : vector<64x4xbf16>, vector<4x128xbf16>, vector<64x128xf32> -> vector<64x128xf32>
    %c0_6 = arith.constant 0 : index
    %c0_7 = arith.constant 0 : index
    %14 = vector.load %arg3[%c0_6, %c0_7] : memref<1x128xf32, #tpu.memory_space<vmem>>, vector<1x128xf32>
    %15 = vector.broadcast %14 : vector<1x128xf32> to vector<64x128xf32>
    %16 = arith.addf %13, %15 : vector<64x128xf32>
    %cst_8 = arith.constant 0.000000e+00 : f32
    %17 = vector.broadcast %cst_8 : f32 to vector<8x32xf32>
    %18 = vector.extract_strided_slice %16 {offsets = [0, 0], sizes = [8, 128], strides = [1, 1]} : vector<64x128xf32> to vector<8x128xf32>
    %19 = arith.mulf %18, %8 : vector<8x128xf32>
    %20 = math.tanh %19 : vector<8x128xf32>
    %cst_9 = arith.constant 5.000000e-01 : f32
    %21 = vector.broadcast %cst_9 : f32 to vector<8x128xf32>
    %22 = arith.mulf %21, %20 : vector<8x128xf32>
    %cst_10 = arith.constant 5.000000e-01 : f32
    %23 = vector.broadcast %cst_10 : f32 to vector<8x128xf32>
    %24 = arith.addf %22, %23 : vector<8x128xf32>
    %25 = arith.select %5, %20, %24 : vector<8x128xi1>, vector<8x128xf32>
    %26 = vector.extract_strided_slice %25 {offsets = [0, 0], sizes = [8, 32], strides = [1, 1]} : vector<8x128xf32> to vector<8x32xf32>
    %27 = vector.extract_strided_slice %25 {offsets = [0, 32], sizes = [8, 32], strides = [1, 1]} : vector<8x128xf32> to vector<8x32xf32>
    %28 = vector.extract_strided_slice %25 {offsets = [0, 64], sizes = [8, 32], strides = [1, 1]} : vector<8x128xf32> to vector<8x32xf32>
    %29 = vector.extract_strided_slice %25 {offsets = [0, 96], sizes = [8, 32], strides = [1, 1]} : vector<8x128xf32> to vector<8x32xf32>
    %30 = arith.mulf %27, %17 : vector<8x32xf32>
    %31 = arith.mulf %26, %28 : vector<8x32xf32>
    %32 = arith.addf %30, %31 : vector<8x32xf32>
    %33 = math.tanh %32 : vector<8x32xf32>
    %34 = arith.mulf %29, %33 : vector<8x32xf32>
    %35 = arith.truncf %34 : vector<8x32xf32> to vector<8x32xbf16>
    %36 = vector.extract_strided_slice %16 {offsets = [8, 0], sizes = [8, 128], strides = [1, 1]} : vector<64x128xf32> to vector<8x128xf32>
    %c0_11 = arith.constant 0 : index
    %c0_12 = arith.constant 0 : index
    %37 = vector.load %arg2[%c0_11, %c0_12] : memref<32x128xbf16, #tpu.memory_space<vmem>>, vector<32x128xbf16>
    %cst_13 = arith.constant dense<0.000000e+00> : vector<8x128xf32>
    %38 = tpu.matmul %35, %37, %cst_13 {dimension_numbers = #tpu.dot_dimension_numbers<[1], [0], [0], [1], [0, 0, 1, 1], [], []>} : vector<8x32xbf16>, vector<32x128xbf16>, vector<8x128xf32> -> vector<8x128xf32>
    %39 = arith.addf %36, %38 : vector<8x128xf32>
    %40 = arith.mulf %39, %8 : vector<8x128xf32>
    %41 = math.tanh %40 : vector<8x128xf32>
    %cst_14 = arith.constant 5.000000e-01 : f32
    %42 = vector.broadcast %cst_14 : f32 to vector<8x128xf32>
    %43 = arith.mulf %42, %41 : vector<8x128xf32>
    %cst_15 = arith.constant 5.000000e-01 : f32
    %44 = vector.broadcast %cst_15 : f32 to vector<8x128xf32>
    %45 = arith.addf %43, %44 : vector<8x128xf32>
    %46 = arith.select %5, %41, %45 : vector<8x128xi1>, vector<8x128xf32>
    %47 = vector.extract_strided_slice %46 {offsets = [0, 0], sizes = [8, 32], strides = [1, 1]} : vector<8x128xf32> to vector<8x32xf32>
    %48 = vector.extract_strided_slice %46 {offsets = [0, 32], sizes = [8, 32], strides = [1, 1]} : vector<8x128xf32> to vector<8x32xf32>
    %49 = vector.extract_strided_slice %46 {offsets = [0, 64], sizes = [8, 32], strides = [1, 1]} : vector<8x128xf32> to vector<8x32xf32>
    %50 = vector.extract_strided_slice %46 {offsets = [0, 96], sizes = [8, 32], strides = [1, 1]} : vector<8x128xf32> to vector<8x32xf32>
    %51 = arith.mulf %48, %32 : vector<8x32xf32>
    %52 = arith.mulf %47, %49 : vector<8x32xf32>
    %53 = arith.addf %51, %52 : vector<8x32xf32>
    %54 = math.tanh %53 : vector<8x32xf32>
    %55 = arith.mulf %50, %54 : vector<8x32xf32>
    %56 = arith.truncf %55 : vector<8x32xf32> to vector<8x32xbf16>
    %c0_16 = arith.constant 0 : index
    %c0_17 = arith.constant 0 : index
    %57 = vector.load %arg4[%c0_16, %c0_17] : memref<32x128xbf16, #tpu.memory_space<vmem>>, vector<32x128xbf16>
    %cst_18 = arith.constant dense<0.000000e+00> : vector<8x128xf32>
    %58 = tpu.matmul %35, %57, %cst_18 {dimension_numbers = #tpu.dot_dimension_numbers<[1], [0], [0], [1], [0, 0, 1, 1], [], []>} : vector<8x32xbf16>, vector<32x128xbf16>, vector<8x128xf32> -> vector<8x128xf32>
    %c0_19 = arith.constant 0 : index
    %c0_20 = arith.constant 0 : index
    %59 = vector.load %arg6[%c0_19, %c0_20] : memref<1x128xf32, #tpu.memory_space<vmem>>, vector<1x128xf32>
    %60 = vector.broadcast %59 : vector<1x128xf32> to vector<8x128xf32>
    %61 = arith.addf %58, %60 : vector<8x128xf32>
    %62 = arith.mulf %61, %8 : vector<8x128xf32>
    %63 = math.tanh %62 : vector<8x128xf32>
    %cst_21 = arith.constant 5.000000e-01 : f32
    %64 = vector.broadcast %cst_21 : f32 to vector<8x128xf32>
    %65 = arith.mulf %64, %63 : vector<8x128xf32>
    %cst_22 = arith.constant 5.000000e-01 : f32
    %66 = vector.broadcast %cst_22 : f32 to vector<8x128xf32>
    %67 = arith.addf %65, %66 : vector<8x128xf32>
    %68 = arith.select %5, %63, %67 : vector<8x128xi1>, vector<8x128xf32>
    %69 = vector.extract_strided_slice %68 {offsets = [0, 0], sizes = [8, 32], strides = [1, 1]} : vector<8x128xf32> to vector<8x32xf32>
    %70 = vector.extract_strided_slice %68 {offsets = [0, 32], sizes = [8, 32], strides = [1, 1]} : vector<8x128xf32> to vector<8x32xf32>
    %71 = vector.extract_strided_slice %68 {offsets = [0, 64], sizes = [8, 32], strides = [1, 1]} : vector<8x128xf32> to vector<8x32xf32>
    %72 = vector.extract_strided_slice %68 {offsets = [0, 96], sizes = [8, 32], strides = [1, 1]} : vector<8x128xf32> to vector<8x32xf32>
    %73 = arith.mulf %70, %17 : vector<8x32xf32>
    %74 = arith.mulf %69, %71 : vector<8x32xf32>
    %75 = arith.addf %73, %74 : vector<8x32xf32>
    %76 = math.tanh %75 : vector<8x32xf32>
    %77 = arith.mulf %72, %76 : vector<8x32xf32>
    %78 = arith.truncf %77 : vector<8x32xf32> to vector<8x32xbf16>
    %79 = vector.extract_strided_slice %16 {offsets = [16, 0], sizes = [8, 128], strides = [1, 1]} : vector<64x128xf32> to vector<8x128xf32>
    %c0_23 = arith.constant 0 : index
    %c0_24 = arith.constant 0 : index
    %80 = vector.load %arg2[%c0_23, %c0_24] : memref<32x128xbf16, #tpu.memory_space<vmem>>, vector<32x128xbf16>
    %cst_25 = arith.constant dense<0.000000e+00> : vector<8x128xf32>
    %81 = tpu.matmul %56, %80, %cst_25 {dimension_numbers = #tpu.dot_dimension_numbers<[1], [0], [0], [1], [0, 0, 1, 1], [], []>} : vector<8x32xbf16>, vector<32x128xbf16>, vector<8x128xf32> -> vector<8x128xf32>
    %82 = arith.addf %79, %81 : vector<8x128xf32>
    %83 = arith.mulf %82, %8 : vector<8x128xf32>
    %84 = math.tanh %83 : vector<8x128xf32>
    %cst_26 = arith.constant 5.000000e-01 : f32
    %85 = vector.broadcast %cst_26 : f32 to vector<8x128xf32>
    %86 = arith.mulf %85, %84 : vector<8x128xf32>
    %cst_27 = arith.constant 5.000000e-01 : f32
    %87 = vector.broadcast %cst_27 : f32 to vector<8x128xf32>
    %88 = arith.addf %86, %87 : vector<8x128xf32>
    %89 = arith.select %5, %84, %88 : vector<8x128xi1>, vector<8x128xf32>
    %90 = vector.extract_strided_slice %89 {offsets = [0, 0], sizes = [8, 32], strides = [1, 1]} : vector<8x128xf32> to vector<8x32xf32>
    %91 = vector.extract_strided_slice %89 {offsets = [0, 32], sizes = [8, 32], strides = [1, 1]} : vector<8x128xf32> to vector<8x32xf32>
    %92 = vector.extract_strided_slice %89 {offsets = [0, 64], sizes = [8, 32], strides = [1, 1]} : vector<8x128xf32> to vector<8x32xf32>
    %93 = vector.extract_strided_slice %89 {offsets = [0, 96], sizes = [8, 32], strides = [1, 1]} : vector<8x128xf32> to vector<8x32xf32>
    %94 = arith.mulf %91, %53 : vector<8x32xf32>
    %95 = arith.mulf %90, %92 : vector<8x32xf32>
    %96 = arith.addf %94, %95 : vector<8x32xf32>
    %97 = math.tanh %96 : vector<8x32xf32>
    %98 = arith.mulf %93, %97 : vector<8x32xf32>
    %99 = arith.truncf %98 : vector<8x32xf32> to vector<8x32xbf16>
    %c0_28 = arith.constant 0 : index
    %c0_29 = arith.constant 0 : index
    %100 = vector.load %arg4[%c0_28, %c0_29] : memref<32x128xbf16, #tpu.memory_space<vmem>>, vector<32x128xbf16>
    %cst_30 = arith.constant dense<0.000000e+00> : vector<8x128xf32>
    %101 = tpu.matmul %56, %100, %cst_30 {dimension_numbers = #tpu.dot_dimension_numbers<[1], [0], [0], [1], [0, 0, 1, 1], [], []>} : vector<8x32xbf16>, vector<32x128xbf16>, vector<8x128xf32> -> vector<8x128xf32>
    %c0_31 = arith.constant 0 : index
    %c0_32 = arith.constant 0 : index
    %102 = vector.load %arg6[%c0_31, %c0_32] : memref<1x128xf32, #tpu.memory_space<vmem>>, vector<1x128xf32>
    %103 = vector.broadcast %102 : vector<1x128xf32> to vector<8x128xf32>
    %104 = arith.addf %101, %103 : vector<8x128xf32>
    %c0_33 = arith.constant 0 : index
    %c0_34 = arith.constant 0 : index
    %105 = vector.load %arg5[%c0_33, %c0_34] : memref<32x128xbf16, #tpu.memory_space<vmem>>, vector<32x128xbf16>
    %cst_35 = arith.constant dense<0.000000e+00> : vector<8x128xf32>
    %106 = tpu.matmul %78, %105, %cst_35 {dimension_numbers = #tpu.dot_dimension_numbers<[1], [0], [0], [1], [0, 0, 1, 1], [], []>} : vector<8x32xbf16>, vector<32x128xbf16>, vector<8x128xf32> -> vector<8x128xf32>
    %107 = arith.addf %104, %106 : vector<8x128xf32>
    %108 = arith.mulf %107, %8 : vector<8x128xf32>
    %109 = math.tanh %108 : vector<8x128xf32>
    %cst_36 = arith.constant 5.000000e-01 : f32
    %110 = vector.broadcast %cst_36 : f32 to vector<8x128xf32>
    %111 = arith.mulf %110, %109 : vector<8x128xf32>
    %cst_37 = arith.constant 5.000000e-01 : f32
    %112 = vector.broadcast %cst_37 : f32 to vector<8x128xf32>
    %113 = arith.addf %111, %112 : vector<8x128xf32>
    %114 = arith.select %5, %109, %113 : vector<8x128xi1>, vector<8x128xf32>
    %115 = vector.extract_strided_slice %114 {offsets = [0, 0], sizes = [8, 32], strides = [1, 1]} : vector<8x128xf32> to vector<8x32xf32>
    %116 = vector.extract_strided_slice %114 {offsets = [0, 32], sizes = [8, 32], strides = [1, 1]} : vector<8x128xf32> to vector<8x32xf32>
    %117 = vector.extract_strided_slice %114 {offsets = [0, 64], sizes = [8, 32], strides = [1, 1]} : vector<8x128xf32> to vector<8x32xf32>
    %118 = vector.extract_strided_slice %114 {offsets = [0, 96], sizes = [8, 32], strides = [1, 1]} : vector<8x128xf32> to vector<8x32xf32>
    %119 = arith.mulf %116, %75 : vector<8x32xf32>
    %120 = arith.mulf %115, %117 : vector<8x32xf32>
    %121 = arith.addf %119, %120 : vector<8x32xf32>
    %122 = math.tanh %121 : vector<8x32xf32>
    %123 = arith.mulf %118, %122 : vector<8x32xf32>
    %124 = arith.truncf %123 : vector<8x32xf32> to vector<8x32xbf16>
    %c0_38 = arith.constant 0 : index
    %c0_39 = arith.constant 0 : index
    %125 = vector.load %arg7[%c0_38, %c0_39] : memref<32x128xbf16, #tpu.memory_space<vmem>>, vector<32x128xbf16>
    %cst_40 = arith.constant dense<0.000000e+00> : vector<8x128xf32>
    %126 = tpu.matmul %78, %125, %cst_40 {dimension_numbers = #tpu.dot_dimension_numbers<[1], [0], [0], [1], [0, 0, 1, 1], [], []>} : vector<8x32xbf16>, vector<32x128xbf16>, vector<8x128xf32> -> vector<8x128xf32>
    %c0_41 = arith.constant 0 : index
    %c0_42 = arith.constant 0 : index
    %127 = vector.load %arg9[%c0_41, %c0_42] : memref<1x128xf32, #tpu.memory_space<vmem>>, vector<1x128xf32>
    %128 = vector.broadcast %127 : vector<1x128xf32> to vector<8x128xf32>
    %129 = arith.addf %126, %128 : vector<8x128xf32>
    %130 = arith.mulf %129, %8 : vector<8x128xf32>
    %131 = math.tanh %130 : vector<8x128xf32>
    %cst_43 = arith.constant 5.000000e-01 : f32
    %132 = vector.broadcast %cst_43 : f32 to vector<8x128xf32>
    %133 = arith.mulf %132, %131 : vector<8x128xf32>
    %cst_44 = arith.constant 5.000000e-01 : f32
    %134 = vector.broadcast %cst_44 : f32 to vector<8x128xf32>
    %135 = arith.addf %133, %134 : vector<8x128xf32>
    %136 = arith.select %5, %131, %135 : vector<8x128xi1>, vector<8x128xf32>
    %137 = vector.extract_strided_slice %136 {offsets = [0, 0], sizes = [8, 32], strides = [1, 1]} : vector<8x128xf32> to vector<8x32xf32>
    %138 = vector.extract_strided_slice %136 {offsets = [0, 32], sizes = [8, 32], strides = [1, 1]} : vector<8x128xf32> to vector<8x32xf32>
    %139 = vector.extract_strided_slice %136 {offsets = [0, 64], sizes = [8, 32], strides = [1, 1]} : vector<8x128xf32> to vector<8x32xf32>
    %140 = vector.extract_strided_slice %136 {offsets = [0, 96], sizes = [8, 32], strides = [1, 1]} : vector<8x128xf32> to vector<8x32xf32>
    %141 = arith.mulf %138, %17 : vector<8x32xf32>
    %142 = arith.mulf %137, %139 : vector<8x32xf32>
    %143 = arith.addf %141, %142 : vector<8x32xf32>
    %144 = math.tanh %143 : vector<8x32xf32>
    %145 = arith.mulf %140, %144 : vector<8x32xf32>
    %146 = arith.truncf %145 : vector<8x32xf32> to vector<8x32xbf16>
    %147 = vector.extract_strided_slice %16 {offsets = [24, 0], sizes = [8, 128], strides = [1, 1]} : vector<64x128xf32> to vector<8x128xf32>
    %c0_45 = arith.constant 0 : index
    %c0_46 = arith.constant 0 : index
    %148 = vector.load %arg2[%c0_45, %c0_46] : memref<32x128xbf16, #tpu.memory_space<vmem>>, vector<32x128xbf16>
    %cst_47 = arith.constant dense<0.000000e+00> : vector<8x128xf32>
    %149 = tpu.matmul %99, %148, %cst_47 {dimension_numbers = #tpu.dot_dimension_numbers<[1], [0], [0], [1], [0, 0, 1, 1], [], []>} : vector<8x32xbf16>, vector<32x128xbf16>, vector<8x128xf32> -> vector<8x128xf32>
    %150 = arith.addf %147, %149 : vector<8x128xf32>
    %151 = arith.mulf %150, %8 : vector<8x128xf32>
    %152 = math.tanh %151 : vector<8x128xf32>
    %cst_48 = arith.constant 5.000000e-01 : f32
    %153 = vector.broadcast %cst_48 : f32 to vector<8x128xf32>
    %154 = arith.mulf %153, %152 : vector<8x128xf32>
    %cst_49 = arith.constant 5.000000e-01 : f32
    %155 = vector.broadcast %cst_49 : f32 to vector<8x128xf32>
    %156 = arith.addf %154, %155 : vector<8x128xf32>
    %157 = arith.select %5, %152, %156 : vector<8x128xi1>, vector<8x128xf32>
    %158 = vector.extract_strided_slice %157 {offsets = [0, 0], sizes = [8, 32], strides = [1, 1]} : vector<8x128xf32> to vector<8x32xf32>
    %159 = vector.extract_strided_slice %157 {offsets = [0, 32], sizes = [8, 32], strides = [1, 1]} : vector<8x128xf32> to vector<8x32xf32>
    %160 = vector.extract_strided_slice %157 {offsets = [0, 64], sizes = [8, 32], strides = [1, 1]} : vector<8x128xf32> to vector<8x32xf32>
    %161 = vector.extract_strided_slice %157 {offsets = [0, 96], sizes = [8, 32], strides = [1, 1]} : vector<8x128xf32> to vector<8x32xf32>
    %162 = arith.mulf %159, %96 : vector<8x32xf32>
    %163 = arith.mulf %158, %160 : vector<8x32xf32>
    %164 = arith.addf %162, %163 : vector<8x32xf32>
    %165 = math.tanh %164 : vector<8x32xf32>
    %166 = arith.mulf %161, %165 : vector<8x32xf32>
    %167 = arith.truncf %166 : vector<8x32xf32> to vector<8x32xbf16>
    %c0_50 = arith.constant 0 : index
    %c0_51 = arith.constant 0 : index
    %168 = vector.load %arg4[%c0_50, %c0_51] : memref<32x128xbf16, #tpu.memory_space<vmem>>, vector<32x128xbf16>
    %cst_52 = arith.constant dense<0.000000e+00> : vector<8x128xf32>
    %169 = tpu.matmul %99, %168, %cst_52 {dimension_numbers = #tpu.dot_dimension_numbers<[1], [0], [0], [1], [0, 0, 1, 1], [], []>} : vector<8x32xbf16>, vector<32x128xbf16>, vector<8x128xf32> -> vector<8x128xf32>
    %c0_53 = arith.constant 0 : index
    %c0_54 = arith.constant 0 : index
    %170 = vector.load %arg6[%c0_53, %c0_54] : memref<1x128xf32, #tpu.memory_space<vmem>>, vector<1x128xf32>
    %171 = vector.broadcast %170 : vector<1x128xf32> to vector<8x128xf32>
    %172 = arith.addf %169, %171 : vector<8x128xf32>
    %c0_55 = arith.constant 0 : index
    %c0_56 = arith.constant 0 : index
    %173 = vector.load %arg5[%c0_55, %c0_56] : memref<32x128xbf16, #tpu.memory_space<vmem>>, vector<32x128xbf16>
    %cst_57 = arith.constant dense<0.000000e+00> : vector<8x128xf32>
    %174 = tpu.matmul %124, %173, %cst_57 {dimension_numbers = #tpu.dot_dimension_numbers<[1], [0], [0], [1], [0, 0, 1, 1], [], []>} : vector<8x32xbf16>, vector<32x128xbf16>, vector<8x128xf32> -> vector<8x128xf32>
    %175 = arith.addf %172, %174 : vector<8x128xf32>
    %176 = arith.mulf %175, %8 : vector<8x128xf32>
    %177 = math.tanh %176 : vector<8x128xf32>
    %cst_58 = arith.constant 5.000000e-01 : f32
    %178 = vector.broadcast %cst_58 : f32 to vector<8x128xf32>
    %179 = arith.mulf %178, %177 : vector<8x128xf32>
    %cst_59 = arith.constant 5.000000e-01 : f32
    %180 = vector.broadcast %cst_59 : f32 to vector<8x128xf32>
    %181 = arith.addf %179, %180 : vector<8x128xf32>
    %182 = arith.select %5, %177, %181 : vector<8x128xi1>, vector<8x128xf32>
    %183 = vector.extract_strided_slice %182 {offsets = [0, 0], sizes = [8, 32], strides = [1, 1]} : vector<8x128xf32> to vector<8x32xf32>
    %184 = vector.extract_strided_slice %182 {offsets = [0, 32], sizes = [8, 32], strides = [1, 1]} : vector<8x128xf32> to vector<8x32xf32>
    %185 = vector.extract_strided_slice %182 {offsets = [0, 64], sizes = [8, 32], strides = [1, 1]} : vector<8x128xf32> to vector<8x32xf32>
    %186 = vector.extract_strided_slice %182 {offsets = [0, 96], sizes = [8, 32], strides = [1, 1]} : vector<8x128xf32> to vector<8x32xf32>
    %187 = arith.mulf %184, %121 : vector<8x32xf32>
    %188 = arith.mulf %183, %185 : vector<8x32xf32>
    %189 = arith.addf %187, %188 : vector<8x32xf32>
    %190 = math.tanh %189 : vector<8x32xf32>
    %191 = arith.mulf %186, %190 : vector<8x32xf32>
    %192 = arith.truncf %191 : vector<8x32xf32> to vector<8x32xbf16>
    %c0_60 = arith.constant 0 : index
    %c0_61 = arith.constant 0 : index
    %193 = vector.load %arg7[%c0_60, %c0_61] : memref<32x128xbf16, #tpu.memory_space<vmem>>, vector<32x128xbf16>
    %cst_62 = arith.constant dense<0.000000e+00> : vector<8x128xf32>
    %194 = tpu.matmul %124, %193, %cst_62 {dimension_numbers = #tpu.dot_dimension_numbers<[1], [0], [0], [1], [0, 0, 1, 1], [], []>} : vector<8x32xbf16>, vector<32x128xbf16>, vector<8x128xf32> -> vector<8x128xf32>
    %c0_63 = arith.constant 0 : index
    %c0_64 = arith.constant 0 : index
    %195 = vector.load %arg9[%c0_63, %c0_64] : memref<1x128xf32, #tpu.memory_space<vmem>>, vector<1x128xf32>
    %196 = vector.broadcast %195 : vector<1x128xf32> to vector<8x128xf32>
    %197 = arith.addf %194, %196 : vector<8x128xf32>
    %c0_65 = arith.constant 0 : index
    %c0_66 = arith.constant 0 : index
    %198 = vector.load %arg8[%c0_65, %c0_66] : memref<32x128xbf16, #tpu.memory_space<vmem>>, vector<32x128xbf16>
    %cst_67 = arith.constant dense<0.000000e+00> : vector<8x128xf32>
    %199 = tpu.matmul %146, %198, %cst_67 {dimension_numbers = #tpu.dot_dimension_numbers<[1], [0], [0], [1], [0, 0, 1, 1], [], []>} : vector<8x32xbf16>, vector<32x128xbf16>, vector<8x128xf32> -> vector<8x128xf32>
    %200 = arith.addf %197, %199 : vector<8x128xf32>
    %201 = arith.mulf %200, %8 : vector<8x128xf32>
    %202 = math.tanh %201 : vector<8x128xf32>
    %cst_68 = arith.constant 5.000000e-01 : f32
    %203 = vector.broadcast %cst_68 : f32 to vector<8x128xf32>
    %204 = arith.mulf %203, %202 : vector<8x128xf32>
    %cst_69 = arith.constant 5.000000e-01 : f32
    %205 = vector.broadcast %cst_69 : f32 to vector<8x128xf32>
    %206 = arith.addf %204, %205 : vector<8x128xf32>
    %207 = arith.select %5, %202, %206 : vector<8x128xi1>, vector<8x128xf32>
    %208 = vector.extract_strided_slice %207 {offsets = [0, 0], sizes = [8, 32], strides = [1, 1]} : vector<8x128xf32> to vector<8x32xf32>
    %209 = vector.extract_strided_slice %207 {offsets = [0, 32], sizes = [8, 32], strides = [1, 1]} : vector<8x128xf32> to vector<8x32xf32>
    %210 = vector.extract_strided_slice %207 {offsets = [0, 64], sizes = [8, 32], strides = [1, 1]} : vector<8x128xf32> to vector<8x32xf32>
    %211 = vector.extract_strided_slice %207 {offsets = [0, 96], sizes = [8, 32], strides = [1, 1]} : vector<8x128xf32> to vector<8x32xf32>
    %212 = arith.mulf %209, %143 : vector<8x32xf32>
    %213 = arith.mulf %208, %210 : vector<8x32xf32>
    %214 = arith.addf %212, %213 : vector<8x32xf32>
    %215 = math.tanh %214 : vector<8x32xf32>
    %216 = arith.mulf %211, %215 : vector<8x32xf32>
    %217 = arith.truncf %216 : vector<8x32xf32> to vector<8x32xbf16>
    %218 = vector.extract_strided_slice %16 {offsets = [32, 0], sizes = [8, 128], strides = [1, 1]} : vector<64x128xf32> to vector<8x128xf32>
    %c0_70 = arith.constant 0 : index
    %c0_71 = arith.constant 0 : index
    %219 = vector.load %arg2[%c0_70, %c0_71] : memref<32x128xbf16, #tpu.memory_space<vmem>>, vector<32x128xbf16>
    %cst_72 = arith.constant dense<0.000000e+00> : vector<8x128xf32>
    %220 = tpu.matmul %167, %219, %cst_72 {dimension_numbers = #tpu.dot_dimension_numbers<[1], [0], [0], [1], [0, 0, 1, 1], [], []>} : vector<8x32xbf16>, vector<32x128xbf16>, vector<8x128xf32> -> vector<8x128xf32>
    %221 = arith.addf %218, %220 : vector<8x128xf32>
    %222 = arith.mulf %221, %8 : vector<8x128xf32>
    %223 = math.tanh %222 : vector<8x128xf32>
    %cst_73 = arith.constant 5.000000e-01 : f32
    %224 = vector.broadcast %cst_73 : f32 to vector<8x128xf32>
    %225 = arith.mulf %224, %223 : vector<8x128xf32>
    %cst_74 = arith.constant 5.000000e-01 : f32
    %226 = vector.broadcast %cst_74 : f32 to vector<8x128xf32>
    %227 = arith.addf %225, %226 : vector<8x128xf32>
    %228 = arith.select %5, %223, %227 : vector<8x128xi1>, vector<8x128xf32>
    %229 = vector.extract_strided_slice %228 {offsets = [0, 0], sizes = [8, 32], strides = [1, 1]} : vector<8x128xf32> to vector<8x32xf32>
    %230 = vector.extract_strided_slice %228 {offsets = [0, 32], sizes = [8, 32], strides = [1, 1]} : vector<8x128xf32> to vector<8x32xf32>
    %231 = vector.extract_strided_slice %228 {offsets = [0, 64], sizes = [8, 32], strides = [1, 1]} : vector<8x128xf32> to vector<8x32xf32>
    %232 = vector.extract_strided_slice %228 {offsets = [0, 96], sizes = [8, 32], strides = [1, 1]} : vector<8x128xf32> to vector<8x32xf32>
    %233 = arith.mulf %230, %164 : vector<8x32xf32>
    %234 = arith.mulf %229, %231 : vector<8x32xf32>
    %235 = arith.addf %233, %234 : vector<8x32xf32>
    %236 = math.tanh %235 : vector<8x32xf32>
    %237 = arith.mulf %232, %236 : vector<8x32xf32>
    %238 = arith.truncf %237 : vector<8x32xf32> to vector<8x32xbf16>
    %c0_75 = arith.constant 0 : index
    %c0_76 = arith.constant 0 : index
    %239 = vector.load %arg4[%c0_75, %c0_76] : memref<32x128xbf16, #tpu.memory_space<vmem>>, vector<32x128xbf16>
    %cst_77 = arith.constant dense<0.000000e+00> : vector<8x128xf32>
    %240 = tpu.matmul %167, %239, %cst_77 {dimension_numbers = #tpu.dot_dimension_numbers<[1], [0], [0], [1], [0, 0, 1, 1], [], []>} : vector<8x32xbf16>, vector<32x128xbf16>, vector<8x128xf32> -> vector<8x128xf32>
    %c0_78 = arith.constant 0 : index
    %c0_79 = arith.constant 0 : index
    %241 = vector.load %arg6[%c0_78, %c0_79] : memref<1x128xf32, #tpu.memory_space<vmem>>, vector<1x128xf32>
    %242 = vector.broadcast %241 : vector<1x128xf32> to vector<8x128xf32>
    %243 = arith.addf %240, %242 : vector<8x128xf32>
    %c0_80 = arith.constant 0 : index
    %c0_81 = arith.constant 0 : index
    %244 = vector.load %arg5[%c0_80, %c0_81] : memref<32x128xbf16, #tpu.memory_space<vmem>>, vector<32x128xbf16>
    %cst_82 = arith.constant dense<0.000000e+00> : vector<8x128xf32>
    %245 = tpu.matmul %192, %244, %cst_82 {dimension_numbers = #tpu.dot_dimension_numbers<[1], [0], [0], [1], [0, 0, 1, 1], [], []>} : vector<8x32xbf16>, vector<32x128xbf16>, vector<8x128xf32> -> vector<8x128xf32>
    %246 = arith.addf %243, %245 : vector<8x128xf32>
    %247 = arith.mulf %246, %8 : vector<8x128xf32>
    %248 = math.tanh %247 : vector<8x128xf32>
    %cst_83 = arith.constant 5.000000e-01 : f32
    %249 = vector.broadcast %cst_83 : f32 to vector<8x128xf32>
    %250 = arith.mulf %249, %248 : vector<8x128xf32>
    %cst_84 = arith.constant 5.000000e-01 : f32
    %251 = vector.broadcast %cst_84 : f32 to vector<8x128xf32>
    %252 = arith.addf %250, %251 : vector<8x128xf32>
    %253 = arith.select %5, %248, %252 : vector<8x128xi1>, vector<8x128xf32>
    %254 = vector.extract_strided_slice %253 {offsets = [0, 0], sizes = [8, 32], strides = [1, 1]} : vector<8x128xf32> to vector<8x32xf32>
    %255 = vector.extract_strided_slice %253 {offsets = [0, 32], sizes = [8, 32], strides = [1, 1]} : vector<8x128xf32> to vector<8x32xf32>
    %256 = vector.extract_strided_slice %253 {offsets = [0, 64], sizes = [8, 32], strides = [1, 1]} : vector<8x128xf32> to vector<8x32xf32>
    %257 = vector.extract_strided_slice %253 {offsets = [0, 96], sizes = [8, 32], strides = [1, 1]} : vector<8x128xf32> to vector<8x32xf32>
    %258 = arith.mulf %255, %189 : vector<8x32xf32>
    %259 = arith.mulf %254, %256 : vector<8x32xf32>
    %260 = arith.addf %258, %259 : vector<8x32xf32>
    %261 = math.tanh %260 : vector<8x32xf32>
    %262 = arith.mulf %257, %261 : vector<8x32xf32>
    %263 = arith.truncf %262 : vector<8x32xf32> to vector<8x32xbf16>
    %c0_85 = arith.constant 0 : index
    %c0_86 = arith.constant 0 : index
    %264 = vector.load %arg7[%c0_85, %c0_86] : memref<32x128xbf16, #tpu.memory_space<vmem>>, vector<32x128xbf16>
    %cst_87 = arith.constant dense<0.000000e+00> : vector<8x128xf32>
    %265 = tpu.matmul %192, %264, %cst_87 {dimension_numbers = #tpu.dot_dimension_numbers<[1], [0], [0], [1], [0, 0, 1, 1], [], []>} : vector<8x32xbf16>, vector<32x128xbf16>, vector<8x128xf32> -> vector<8x128xf32>
    %c0_88 = arith.constant 0 : index
    %c0_89 = arith.constant 0 : index
    %266 = vector.load %arg9[%c0_88, %c0_89] : memref<1x128xf32, #tpu.memory_space<vmem>>, vector<1x128xf32>
    %267 = vector.broadcast %266 : vector<1x128xf32> to vector<8x128xf32>
    %268 = arith.addf %265, %267 : vector<8x128xf32>
    %c0_90 = arith.constant 0 : index
    %c0_91 = arith.constant 0 : index
    %269 = vector.load %arg8[%c0_90, %c0_91] : memref<32x128xbf16, #tpu.memory_space<vmem>>, vector<32x128xbf16>
    %cst_92 = arith.constant dense<0.000000e+00> : vector<8x128xf32>
    %270 = tpu.matmul %217, %269, %cst_92 {dimension_numbers = #tpu.dot_dimension_numbers<[1], [0], [0], [1], [0, 0, 1, 1], [], []>} : vector<8x32xbf16>, vector<32x128xbf16>, vector<8x128xf32> -> vector<8x128xf32>
    %271 = arith.addf %268, %270 : vector<8x128xf32>
    %272 = arith.mulf %271, %8 : vector<8x128xf32>
    %273 = math.tanh %272 : vector<8x128xf32>
    %cst_93 = arith.constant 5.000000e-01 : f32
    %274 = vector.broadcast %cst_93 : f32 to vector<8x128xf32>
    %275 = arith.mulf %274, %273 : vector<8x128xf32>
    %cst_94 = arith.constant 5.000000e-01 : f32
    %276 = vector.broadcast %cst_94 : f32 to vector<8x128xf32>
    %277 = arith.addf %275, %276 : vector<8x128xf32>
    %278 = arith.select %5, %273, %277 : vector<8x128xi1>, vector<8x128xf32>
    %279 = vector.extract_strided_slice %278 {offsets = [0, 0], sizes = [8, 32], strides = [1, 1]} : vector<8x128xf32> to vector<8x32xf32>
    %280 = vector.extract_strided_slice %278 {offsets = [0, 32], sizes = [8, 32], strides = [1, 1]} : vector<8x128xf32> to vector<8x32xf32>
    %281 = vector.extract_strided_slice %278 {offsets = [0, 64], sizes = [8, 32], strides = [1, 1]} : vector<8x128xf32> to vector<8x32xf32>
    %282 = vector.extract_strided_slice %278 {offsets = [0, 96], sizes = [8, 32], strides = [1, 1]} : vector<8x128xf32> to vector<8x32xf32>
    %283 = arith.mulf %280, %214 : vector<8x32xf32>
    %284 = arith.mulf %279, %281 : vector<8x32xf32>
    %285 = arith.addf %283, %284 : vector<8x32xf32>
    %286 = math.tanh %285 : vector<8x32xf32>
    %287 = arith.mulf %282, %286 : vector<8x32xf32>
    %288 = arith.truncf %287 : vector<8x32xf32> to vector<8x32xbf16>
    %289 = vector.extract_strided_slice %16 {offsets = [40, 0], sizes = [8, 128], strides = [1, 1]} : vector<64x128xf32> to vector<8x128xf32>
    %c0_95 = arith.constant 0 : index
    %c0_96 = arith.constant 0 : index
    %290 = vector.load %arg2[%c0_95, %c0_96] : memref<32x128xbf16, #tpu.memory_space<vmem>>, vector<32x128xbf16>
    %cst_97 = arith.constant dense<0.000000e+00> : vector<8x128xf32>
    %291 = tpu.matmul %238, %290, %cst_97 {dimension_numbers = #tpu.dot_dimension_numbers<[1], [0], [0], [1], [0, 0, 1, 1], [], []>} : vector<8x32xbf16>, vector<32x128xbf16>, vector<8x128xf32> -> vector<8x128xf32>
    %292 = arith.addf %289, %291 : vector<8x128xf32>
    %293 = arith.mulf %292, %8 : vector<8x128xf32>
    %294 = math.tanh %293 : vector<8x128xf32>
    %cst_98 = arith.constant 5.000000e-01 : f32
    %295 = vector.broadcast %cst_98 : f32 to vector<8x128xf32>
    %296 = arith.mulf %295, %294 : vector<8x128xf32>
    %cst_99 = arith.constant 5.000000e-01 : f32
    %297 = vector.broadcast %cst_99 : f32 to vector<8x128xf32>
    %298 = arith.addf %296, %297 : vector<8x128xf32>
    %299 = arith.select %5, %294, %298 : vector<8x128xi1>, vector<8x128xf32>
    %300 = vector.extract_strided_slice %299 {offsets = [0, 0], sizes = [8, 32], strides = [1, 1]} : vector<8x128xf32> to vector<8x32xf32>
    %301 = vector.extract_strided_slice %299 {offsets = [0, 32], sizes = [8, 32], strides = [1, 1]} : vector<8x128xf32> to vector<8x32xf32>
    %302 = vector.extract_strided_slice %299 {offsets = [0, 64], sizes = [8, 32], strides = [1, 1]} : vector<8x128xf32> to vector<8x32xf32>
    %303 = vector.extract_strided_slice %299 {offsets = [0, 96], sizes = [8, 32], strides = [1, 1]} : vector<8x128xf32> to vector<8x32xf32>
    %304 = arith.mulf %301, %235 : vector<8x32xf32>
    %305 = arith.mulf %300, %302 : vector<8x32xf32>
    %306 = arith.addf %304, %305 : vector<8x32xf32>
    %307 = math.tanh %306 : vector<8x32xf32>
    %308 = arith.mulf %303, %307 : vector<8x32xf32>
    %309 = arith.truncf %308 : vector<8x32xf32> to vector<8x32xbf16>
    %c0_100 = arith.constant 0 : index
    %c0_101 = arith.constant 0 : index
    %310 = vector.load %arg4[%c0_100, %c0_101] : memref<32x128xbf16, #tpu.memory_space<vmem>>, vector<32x128xbf16>
    %cst_102 = arith.constant dense<0.000000e+00> : vector<8x128xf32>
    %311 = tpu.matmul %238, %310, %cst_102 {dimension_numbers = #tpu.dot_dimension_numbers<[1], [0], [0], [1], [0, 0, 1, 1], [], []>} : vector<8x32xbf16>, vector<32x128xbf16>, vector<8x128xf32> -> vector<8x128xf32>
    %c0_103 = arith.constant 0 : index
    %c0_104 = arith.constant 0 : index
    %312 = vector.load %arg6[%c0_103, %c0_104] : memref<1x128xf32, #tpu.memory_space<vmem>>, vector<1x128xf32>
    %313 = vector.broadcast %312 : vector<1x128xf32> to vector<8x128xf32>
    %314 = arith.addf %311, %313 : vector<8x128xf32>
    %c0_105 = arith.constant 0 : index
    %c0_106 = arith.constant 0 : index
    %315 = vector.load %arg5[%c0_105, %c0_106] : memref<32x128xbf16, #tpu.memory_space<vmem>>, vector<32x128xbf16>
    %cst_107 = arith.constant dense<0.000000e+00> : vector<8x128xf32>
    %316 = tpu.matmul %263, %315, %cst_107 {dimension_numbers = #tpu.dot_dimension_numbers<[1], [0], [0], [1], [0, 0, 1, 1], [], []>} : vector<8x32xbf16>, vector<32x128xbf16>, vector<8x128xf32> -> vector<8x128xf32>
    %317 = arith.addf %314, %316 : vector<8x128xf32>
    %318 = arith.mulf %317, %8 : vector<8x128xf32>
    %319 = math.tanh %318 : vector<8x128xf32>
    %cst_108 = arith.constant 5.000000e-01 : f32
    %320 = vector.broadcast %cst_108 : f32 to vector<8x128xf32>
    %321 = arith.mulf %320, %319 : vector<8x128xf32>
    %cst_109 = arith.constant 5.000000e-01 : f32
    %322 = vector.broadcast %cst_109 : f32 to vector<8x128xf32>
    %323 = arith.addf %321, %322 : vector<8x128xf32>
    %324 = arith.select %5, %319, %323 : vector<8x128xi1>, vector<8x128xf32>
    %325 = vector.extract_strided_slice %324 {offsets = [0, 0], sizes = [8, 32], strides = [1, 1]} : vector<8x128xf32> to vector<8x32xf32>
    %326 = vector.extract_strided_slice %324 {offsets = [0, 32], sizes = [8, 32], strides = [1, 1]} : vector<8x128xf32> to vector<8x32xf32>
    %327 = vector.extract_strided_slice %324 {offsets = [0, 64], sizes = [8, 32], strides = [1, 1]} : vector<8x128xf32> to vector<8x32xf32>
    %328 = vector.extract_strided_slice %324 {offsets = [0, 96], sizes = [8, 32], strides = [1, 1]} : vector<8x128xf32> to vector<8x32xf32>
    %329 = arith.mulf %326, %260 : vector<8x32xf32>
    %330 = arith.mulf %325, %327 : vector<8x32xf32>
    %331 = arith.addf %329, %330 : vector<8x32xf32>
    %332 = math.tanh %331 : vector<8x32xf32>
    %333 = arith.mulf %328, %332 : vector<8x32xf32>
    %334 = arith.truncf %333 : vector<8x32xf32> to vector<8x32xbf16>
    %c0_110 = arith.constant 0 : index
    %c0_111 = arith.constant 0 : index
    %335 = vector.load %arg7[%c0_110, %c0_111] : memref<32x128xbf16, #tpu.memory_space<vmem>>, vector<32x128xbf16>
    %cst_112 = arith.constant dense<0.000000e+00> : vector<8x128xf32>
    %336 = tpu.matmul %263, %335, %cst_112 {dimension_numbers = #tpu.dot_dimension_numbers<[1], [0], [0], [1], [0, 0, 1, 1], [], []>} : vector<8x32xbf16>, vector<32x128xbf16>, vector<8x128xf32> -> vector<8x128xf32>
    %c0_113 = arith.constant 0 : index
    %c0_114 = arith.constant 0 : index
    %337 = vector.load %arg9[%c0_113, %c0_114] : memref<1x128xf32, #tpu.memory_space<vmem>>, vector<1x128xf32>
    %338 = vector.broadcast %337 : vector<1x128xf32> to vector<8x128xf32>
    %339 = arith.addf %336, %338 : vector<8x128xf32>
    %c0_115 = arith.constant 0 : index
    %c0_116 = arith.constant 0 : index
    %340 = vector.load %arg8[%c0_115, %c0_116] : memref<32x128xbf16, #tpu.memory_space<vmem>>, vector<32x128xbf16>
    %cst_117 = arith.constant dense<0.000000e+00> : vector<8x128xf32>
    %341 = tpu.matmul %288, %340, %cst_117 {dimension_numbers = #tpu.dot_dimension_numbers<[1], [0], [0], [1], [0, 0, 1, 1], [], []>} : vector<8x32xbf16>, vector<32x128xbf16>, vector<8x128xf32> -> vector<8x128xf32>
    %342 = arith.addf %339, %341 : vector<8x128xf32>
    %343 = arith.mulf %342, %8 : vector<8x128xf32>
    %344 = math.tanh %343 : vector<8x128xf32>
    %cst_118 = arith.constant 5.000000e-01 : f32
    %345 = vector.broadcast %cst_118 : f32 to vector<8x128xf32>
    %346 = arith.mulf %345, %344 : vector<8x128xf32>
    %cst_119 = arith.constant 5.000000e-01 : f32
    %347 = vector.broadcast %cst_119 : f32 to vector<8x128xf32>
    %348 = arith.addf %346, %347 : vector<8x128xf32>
    %349 = arith.select %5, %344, %348 : vector<8x128xi1>, vector<8x128xf32>
    %350 = vector.extract_strided_slice %349 {offsets = [0, 0], sizes = [8, 32], strides = [1, 1]} : vector<8x128xf32> to vector<8x32xf32>
    %351 = vector.extract_strided_slice %349 {offsets = [0, 32], sizes = [8, 32], strides = [1, 1]} : vector<8x128xf32> to vector<8x32xf32>
    %352 = vector.extract_strided_slice %349 {offsets = [0, 64], sizes = [8, 32], strides = [1, 1]} : vector<8x128xf32> to vector<8x32xf32>
    %353 = vector.extract_strided_slice %349 {offsets = [0, 96], sizes = [8, 32], strides = [1, 1]} : vector<8x128xf32> to vector<8x32xf32>
    %354 = arith.mulf %351, %285 : vector<8x32xf32>
    %355 = arith.mulf %350, %352 : vector<8x32xf32>
    %356 = arith.addf %354, %355 : vector<8x32xf32>
    %357 = math.tanh %356 : vector<8x32xf32>
    %358 = arith.mulf %353, %357 : vector<8x32xf32>
    %359 = arith.truncf %358 : vector<8x32xf32> to vector<8x32xbf16>
    %360 = vector.extract_strided_slice %16 {offsets = [48, 0], sizes = [8, 128], strides = [1, 1]} : vector<64x128xf32> to vector<8x128xf32>
    %c0_120 = arith.constant 0 : index
    %c0_121 = arith.constant 0 : index
    %361 = vector.load %arg2[%c0_120, %c0_121] : memref<32x128xbf16, #tpu.memory_space<vmem>>, vector<32x128xbf16>
    %cst_122 = arith.constant dense<0.000000e+00> : vector<8x128xf32>
    %362 = tpu.matmul %309, %361, %cst_122 {dimension_numbers = #tpu.dot_dimension_numbers<[1], [0], [0], [1], [0, 0, 1, 1], [], []>} : vector<8x32xbf16>, vector<32x128xbf16>, vector<8x128xf32> -> vector<8x128xf32>
    %363 = arith.addf %360, %362 : vector<8x128xf32>
    %364 = arith.mulf %363, %8 : vector<8x128xf32>
    %365 = math.tanh %364 : vector<8x128xf32>
    %cst_123 = arith.constant 5.000000e-01 : f32
    %366 = vector.broadcast %cst_123 : f32 to vector<8x128xf32>
    %367 = arith.mulf %366, %365 : vector<8x128xf32>
    %cst_124 = arith.constant 5.000000e-01 : f32
    %368 = vector.broadcast %cst_124 : f32 to vector<8x128xf32>
    %369 = arith.addf %367, %368 : vector<8x128xf32>
    %370 = arith.select %5, %365, %369 : vector<8x128xi1>, vector<8x128xf32>
    %371 = vector.extract_strided_slice %370 {offsets = [0, 0], sizes = [8, 32], strides = [1, 1]} : vector<8x128xf32> to vector<8x32xf32>
    %372 = vector.extract_strided_slice %370 {offsets = [0, 32], sizes = [8, 32], strides = [1, 1]} : vector<8x128xf32> to vector<8x32xf32>
    %373 = vector.extract_strided_slice %370 {offsets = [0, 64], sizes = [8, 32], strides = [1, 1]} : vector<8x128xf32> to vector<8x32xf32>
    %374 = vector.extract_strided_slice %370 {offsets = [0, 96], sizes = [8, 32], strides = [1, 1]} : vector<8x128xf32> to vector<8x32xf32>
    %375 = arith.mulf %372, %306 : vector<8x32xf32>
    %376 = arith.mulf %371, %373 : vector<8x32xf32>
    %377 = arith.addf %375, %376 : vector<8x32xf32>
    %378 = math.tanh %377 : vector<8x32xf32>
    %379 = arith.mulf %374, %378 : vector<8x32xf32>
    %380 = arith.truncf %379 : vector<8x32xf32> to vector<8x32xbf16>
    %c0_125 = arith.constant 0 : index
    %c0_126 = arith.constant 0 : index
    %381 = vector.load %arg4[%c0_125, %c0_126] : memref<32x128xbf16, #tpu.memory_space<vmem>>, vector<32x128xbf16>
    %cst_127 = arith.constant dense<0.000000e+00> : vector<8x128xf32>
    %382 = tpu.matmul %309, %381, %cst_127 {dimension_numbers = #tpu.dot_dimension_numbers<[1], [0], [0], [1], [0, 0, 1, 1], [], []>} : vector<8x32xbf16>, vector<32x128xbf16>, vector<8x128xf32> -> vector<8x128xf32>
    %c0_128 = arith.constant 0 : index
    %c0_129 = arith.constant 0 : index
    %383 = vector.load %arg6[%c0_128, %c0_129] : memref<1x128xf32, #tpu.memory_space<vmem>>, vector<1x128xf32>
    %384 = vector.broadcast %383 : vector<1x128xf32> to vector<8x128xf32>
    %385 = arith.addf %382, %384 : vector<8x128xf32>
    %c0_130 = arith.constant 0 : index
    %c0_131 = arith.constant 0 : index
    %386 = vector.load %arg5[%c0_130, %c0_131] : memref<32x128xbf16, #tpu.memory_space<vmem>>, vector<32x128xbf16>
    %cst_132 = arith.constant dense<0.000000e+00> : vector<8x128xf32>
    %387 = tpu.matmul %334, %386, %cst_132 {dimension_numbers = #tpu.dot_dimension_numbers<[1], [0], [0], [1], [0, 0, 1, 1], [], []>} : vector<8x32xbf16>, vector<32x128xbf16>, vector<8x128xf32> -> vector<8x128xf32>
    %388 = arith.addf %385, %387 : vector<8x128xf32>
    %389 = arith.mulf %388, %8 : vector<8x128xf32>
    %390 = math.tanh %389 : vector<8x128xf32>
    %cst_133 = arith.constant 5.000000e-01 : f32
    %391 = vector.broadcast %cst_133 : f32 to vector<8x128xf32>
    %392 = arith.mulf %391, %390 : vector<8x128xf32>
    %cst_134 = arith.constant 5.000000e-01 : f32
    %393 = vector.broadcast %cst_134 : f32 to vector<8x128xf32>
    %394 = arith.addf %392, %393 : vector<8x128xf32>
    %395 = arith.select %5, %390, %394 : vector<8x128xi1>, vector<8x128xf32>
    %396 = vector.extract_strided_slice %395 {offsets = [0, 0], sizes = [8, 32], strides = [1, 1]} : vector<8x128xf32> to vector<8x32xf32>
    %397 = vector.extract_strided_slice %395 {offsets = [0, 32], sizes = [8, 32], strides = [1, 1]} : vector<8x128xf32> to vector<8x32xf32>
    %398 = vector.extract_strided_slice %395 {offsets = [0, 64], sizes = [8, 32], strides = [1, 1]} : vector<8x128xf32> to vector<8x32xf32>
    %399 = vector.extract_strided_slice %395 {offsets = [0, 96], sizes = [8, 32], strides = [1, 1]} : vector<8x128xf32> to vector<8x32xf32>
    %400 = arith.mulf %397, %331 : vector<8x32xf32>
    %401 = arith.mulf %396, %398 : vector<8x32xf32>
    %402 = arith.addf %400, %401 : vector<8x32xf32>
    %403 = math.tanh %402 : vector<8x32xf32>
    %404 = arith.mulf %399, %403 : vector<8x32xf32>
    %405 = arith.truncf %404 : vector<8x32xf32> to vector<8x32xbf16>
    %c0_135 = arith.constant 0 : index
    %c0_136 = arith.constant 0 : index
    %406 = vector.load %arg7[%c0_135, %c0_136] : memref<32x128xbf16, #tpu.memory_space<vmem>>, vector<32x128xbf16>
    %cst_137 = arith.constant dense<0.000000e+00> : vector<8x128xf32>
    %407 = tpu.matmul %334, %406, %cst_137 {dimension_numbers = #tpu.dot_dimension_numbers<[1], [0], [0], [1], [0, 0, 1, 1], [], []>} : vector<8x32xbf16>, vector<32x128xbf16>, vector<8x128xf32> -> vector<8x128xf32>
    %c0_138 = arith.constant 0 : index
    %c0_139 = arith.constant 0 : index
    %408 = vector.load %arg9[%c0_138, %c0_139] : memref<1x128xf32, #tpu.memory_space<vmem>>, vector<1x128xf32>
    %409 = vector.broadcast %408 : vector<1x128xf32> to vector<8x128xf32>
    %410 = arith.addf %407, %409 : vector<8x128xf32>
    %c0_140 = arith.constant 0 : index
    %c0_141 = arith.constant 0 : index
    %411 = vector.load %arg8[%c0_140, %c0_141] : memref<32x128xbf16, #tpu.memory_space<vmem>>, vector<32x128xbf16>
    %cst_142 = arith.constant dense<0.000000e+00> : vector<8x128xf32>
    %412 = tpu.matmul %359, %411, %cst_142 {dimension_numbers = #tpu.dot_dimension_numbers<[1], [0], [0], [1], [0, 0, 1, 1], [], []>} : vector<8x32xbf16>, vector<32x128xbf16>, vector<8x128xf32> -> vector<8x128xf32>
    %413 = arith.addf %410, %412 : vector<8x128xf32>
    %414 = arith.mulf %413, %8 : vector<8x128xf32>
    %415 = math.tanh %414 : vector<8x128xf32>
    %cst_143 = arith.constant 5.000000e-01 : f32
    %416 = vector.broadcast %cst_143 : f32 to vector<8x128xf32>
    %417 = arith.mulf %416, %415 : vector<8x128xf32>
    %cst_144 = arith.constant 5.000000e-01 : f32
    %418 = vector.broadcast %cst_144 : f32 to vector<8x128xf32>
    %419 = arith.addf %417, %418 : vector<8x128xf32>
    %420 = arith.select %5, %415, %419 : vector<8x128xi1>, vector<8x128xf32>
    %421 = vector.extract_strided_slice %420 {offsets = [0, 0], sizes = [8, 32], strides = [1, 1]} : vector<8x128xf32> to vector<8x32xf32>
    %422 = vector.extract_strided_slice %420 {offsets = [0, 32], sizes = [8, 32], strides = [1, 1]} : vector<8x128xf32> to vector<8x32xf32>
    %423 = vector.extract_strided_slice %420 {offsets = [0, 64], sizes = [8, 32], strides = [1, 1]} : vector<8x128xf32> to vector<8x32xf32>
    %424 = vector.extract_strided_slice %420 {offsets = [0, 96], sizes = [8, 32], strides = [1, 1]} : vector<8x128xf32> to vector<8x32xf32>
    %425 = arith.mulf %422, %356 : vector<8x32xf32>
    %426 = arith.mulf %421, %423 : vector<8x32xf32>
    %427 = arith.addf %425, %426 : vector<8x32xf32>
    %428 = math.tanh %427 : vector<8x32xf32>
    %429 = arith.mulf %424, %428 : vector<8x32xf32>
    %430 = arith.truncf %429 : vector<8x32xf32> to vector<8x32xbf16>
    %431 = vector.extract_strided_slice %16 {offsets = [56, 0], sizes = [8, 128], strides = [1, 1]} : vector<64x128xf32> to vector<8x128xf32>
    %c0_145 = arith.constant 0 : index
    %c0_146 = arith.constant 0 : index
    %432 = vector.load %arg2[%c0_145, %c0_146] : memref<32x128xbf16, #tpu.memory_space<vmem>>, vector<32x128xbf16>
    %cst_147 = arith.constant dense<0.000000e+00> : vector<8x128xf32>
    %433 = tpu.matmul %380, %432, %cst_147 {dimension_numbers = #tpu.dot_dimension_numbers<[1], [0], [0], [1], [0, 0, 1, 1], [], []>} : vector<8x32xbf16>, vector<32x128xbf16>, vector<8x128xf32> -> vector<8x128xf32>
    %434 = arith.addf %431, %433 : vector<8x128xf32>
    %435 = arith.mulf %434, %8 : vector<8x128xf32>
    %436 = math.tanh %435 : vector<8x128xf32>
    %cst_148 = arith.constant 5.000000e-01 : f32
    %437 = vector.broadcast %cst_148 : f32 to vector<8x128xf32>
    %438 = arith.mulf %437, %436 : vector<8x128xf32>
    %cst_149 = arith.constant 5.000000e-01 : f32
    %439 = vector.broadcast %cst_149 : f32 to vector<8x128xf32>
    %440 = arith.addf %438, %439 : vector<8x128xf32>
    %441 = arith.select %5, %436, %440 : vector<8x128xi1>, vector<8x128xf32>
    %442 = vector.extract_strided_slice %441 {offsets = [0, 0], sizes = [8, 32], strides = [1, 1]} : vector<8x128xf32> to vector<8x32xf32>
    %443 = vector.extract_strided_slice %441 {offsets = [0, 32], sizes = [8, 32], strides = [1, 1]} : vector<8x128xf32> to vector<8x32xf32>
    %444 = vector.extract_strided_slice %441 {offsets = [0, 64], sizes = [8, 32], strides = [1, 1]} : vector<8x128xf32> to vector<8x32xf32>
    %445 = vector.extract_strided_slice %441 {offsets = [0, 96], sizes = [8, 32], strides = [1, 1]} : vector<8x128xf32> to vector<8x32xf32>
    %446 = arith.mulf %443, %377 : vector<8x32xf32>
    %447 = arith.mulf %442, %444 : vector<8x32xf32>
    %448 = arith.addf %446, %447 : vector<8x32xf32>
    %449 = math.tanh %448 : vector<8x32xf32>
    %450 = arith.mulf %445, %449 : vector<8x32xf32>
    %451 = arith.truncf %450 : vector<8x32xf32> to vector<8x32xbf16>
    %c0_150 = arith.constant 0 : index
    %c0_151 = arith.constant 0 : index
    %452 = vector.load %arg4[%c0_150, %c0_151] : memref<32x128xbf16, #tpu.memory_space<vmem>>, vector<32x128xbf16>
    %cst_152 = arith.constant dense<0.000000e+00> : vector<8x128xf32>
    %453 = tpu.matmul %380, %452, %cst_152 {dimension_numbers = #tpu.dot_dimension_numbers<[1], [0], [0], [1], [0, 0, 1, 1], [], []>} : vector<8x32xbf16>, vector<32x128xbf16>, vector<8x128xf32> -> vector<8x128xf32>
    %c0_153 = arith.constant 0 : index
    %c0_154 = arith.constant 0 : index
    %454 = vector.load %arg6[%c0_153, %c0_154] : memref<1x128xf32, #tpu.memory_space<vmem>>, vector<1x128xf32>
    %455 = vector.broadcast %454 : vector<1x128xf32> to vector<8x128xf32>
    %456 = arith.addf %453, %455 : vector<8x128xf32>
    %c0_155 = arith.constant 0 : index
    %c0_156 = arith.constant 0 : index
    %457 = vector.load %arg5[%c0_155, %c0_156] : memref<32x128xbf16, #tpu.memory_space<vmem>>, vector<32x128xbf16>
    %cst_157 = arith.constant dense<0.000000e+00> : vector<8x128xf32>
    %458 = tpu.matmul %405, %457, %cst_157 {dimension_numbers = #tpu.dot_dimension_numbers<[1], [0], [0], [1], [0, 0, 1, 1], [], []>} : vector<8x32xbf16>, vector<32x128xbf16>, vector<8x128xf32> -> vector<8x128xf32>
    %459 = arith.addf %456, %458 : vector<8x128xf32>
    %460 = arith.mulf %459, %8 : vector<8x128xf32>
    %461 = math.tanh %460 : vector<8x128xf32>
    %cst_158 = arith.constant 5.000000e-01 : f32
    %462 = vector.broadcast %cst_158 : f32 to vector<8x128xf32>
    %463 = arith.mulf %462, %461 : vector<8x128xf32>
    %cst_159 = arith.constant 5.000000e-01 : f32
    %464 = vector.broadcast %cst_159 : f32 to vector<8x128xf32>
    %465 = arith.addf %463, %464 : vector<8x128xf32>
    %466 = arith.select %5, %461, %465 : vector<8x128xi1>, vector<8x128xf32>
    %467 = vector.extract_strided_slice %466 {offsets = [0, 0], sizes = [8, 32], strides = [1, 1]} : vector<8x128xf32> to vector<8x32xf32>
    %468 = vector.extract_strided_slice %466 {offsets = [0, 32], sizes = [8, 32], strides = [1, 1]} : vector<8x128xf32> to vector<8x32xf32>
    %469 = vector.extract_strided_slice %466 {offsets = [0, 64], sizes = [8, 32], strides = [1, 1]} : vector<8x128xf32> to vector<8x32xf32>
    %470 = vector.extract_strided_slice %466 {offsets = [0, 96], sizes = [8, 32], strides = [1, 1]} : vector<8x128xf32> to vector<8x32xf32>
    %471 = arith.mulf %468, %402 : vector<8x32xf32>
    %472 = arith.mulf %467, %469 : vector<8x32xf32>
    %473 = arith.addf %471, %472 : vector<8x32xf32>
    %474 = math.tanh %473 : vector<8x32xf32>
    %475 = arith.mulf %470, %474 : vector<8x32xf32>
    %476 = arith.truncf %475 : vector<8x32xf32> to vector<8x32xbf16>
    %c0_160 = arith.constant 0 : index
    %c0_161 = arith.constant 0 : index
    %477 = vector.load %arg7[%c0_160, %c0_161] : memref<32x128xbf16, #tpu.memory_space<vmem>>, vector<32x128xbf16>
    %cst_162 = arith.constant dense<0.000000e+00> : vector<8x128xf32>
    %478 = tpu.matmul %405, %477, %cst_162 {dimension_numbers = #tpu.dot_dimension_numbers<[1], [0], [0], [1], [0, 0, 1, 1], [], []>} : vector<8x32xbf16>, vector<32x128xbf16>, vector<8x128xf32> -> vector<8x128xf32>
    %c0_163 = arith.constant 0 : index
    %c0_164 = arith.constant 0 : index
    %479 = vector.load %arg9[%c0_163, %c0_164] : memref<1x128xf32, #tpu.memory_space<vmem>>, vector<1x128xf32>
    %480 = vector.broadcast %479 : vector<1x128xf32> to vector<8x128xf32>
    %481 = arith.addf %478, %480 : vector<8x128xf32>
    %c0_165 = arith.constant 0 : index
    %c0_166 = arith.constant 0 : index
    %482 = vector.load %arg8[%c0_165, %c0_166] : memref<32x128xbf16, #tpu.memory_space<vmem>>, vector<32x128xbf16>
    %cst_167 = arith.constant dense<0.000000e+00> : vector<8x128xf32>
    %483 = tpu.matmul %430, %482, %cst_167 {dimension_numbers = #tpu.dot_dimension_numbers<[1], [0], [0], [1], [0, 0, 1, 1], [], []>} : vector<8x32xbf16>, vector<32x128xbf16>, vector<8x128xf32> -> vector<8x128xf32>
    %484 = arith.addf %481, %483 : vector<8x128xf32>
    %485 = arith.mulf %484, %8 : vector<8x128xf32>
    %486 = math.tanh %485 : vector<8x128xf32>
    %cst_168 = arith.constant 5.000000e-01 : f32
    %487 = vector.broadcast %cst_168 : f32 to vector<8x128xf32>
    %488 = arith.mulf %487, %486 : vector<8x128xf32>
    %cst_169 = arith.constant 5.000000e-01 : f32
    %489 = vector.broadcast %cst_169 : f32 to vector<8x128xf32>
    %490 = arith.addf %488, %489 : vector<8x128xf32>
    %491 = arith.select %5, %486, %490 : vector<8x128xi1>, vector<8x128xf32>
    %492 = vector.extract_strided_slice %491 {offsets = [0, 0], sizes = [8, 32], strides = [1, 1]} : vector<8x128xf32> to vector<8x32xf32>
    %493 = vector.extract_strided_slice %491 {offsets = [0, 32], sizes = [8, 32], strides = [1, 1]} : vector<8x128xf32> to vector<8x32xf32>
    %494 = vector.extract_strided_slice %491 {offsets = [0, 64], sizes = [8, 32], strides = [1, 1]} : vector<8x128xf32> to vector<8x32xf32>
    %495 = vector.extract_strided_slice %491 {offsets = [0, 96], sizes = [8, 32], strides = [1, 1]} : vector<8x128xf32> to vector<8x32xf32>
    %496 = arith.mulf %493, %427 : vector<8x32xf32>
    %497 = arith.mulf %492, %494 : vector<8x32xf32>
    %498 = arith.addf %496, %497 : vector<8x32xf32>
    %499 = math.tanh %498 : vector<8x32xf32>
    %500 = arith.mulf %495, %499 : vector<8x32xf32>
    %501 = arith.truncf %500 : vector<8x32xf32> to vector<8x32xbf16>
    %c0_170 = arith.constant 0 : index
    %c0_171 = arith.constant 0 : index
    %502 = vector.load %arg4[%c0_170, %c0_171] : memref<32x128xbf16, #tpu.memory_space<vmem>>, vector<32x128xbf16>
    %cst_172 = arith.constant dense<0.000000e+00> : vector<8x128xf32>
    %503 = tpu.matmul %451, %502, %cst_172 {dimension_numbers = #tpu.dot_dimension_numbers<[1], [0], [0], [1], [0, 0, 1, 1], [], []>} : vector<8x32xbf16>, vector<32x128xbf16>, vector<8x128xf32> -> vector<8x128xf32>
    %c0_173 = arith.constant 0 : index
    %c0_174 = arith.constant 0 : index
    %504 = vector.load %arg6[%c0_173, %c0_174] : memref<1x128xf32, #tpu.memory_space<vmem>>, vector<1x128xf32>
    %505 = vector.broadcast %504 : vector<1x128xf32> to vector<8x128xf32>
    %506 = arith.addf %503, %505 : vector<8x128xf32>
    %c0_175 = arith.constant 0 : index
    %c0_176 = arith.constant 0 : index
    %507 = vector.load %arg5[%c0_175, %c0_176] : memref<32x128xbf16, #tpu.memory_space<vmem>>, vector<32x128xbf16>
    %cst_177 = arith.constant dense<0.000000e+00> : vector<8x128xf32>
    %508 = tpu.matmul %476, %507, %cst_177 {dimension_numbers = #tpu.dot_dimension_numbers<[1], [0], [0], [1], [0, 0, 1, 1], [], []>} : vector<8x32xbf16>, vector<32x128xbf16>, vector<8x128xf32> -> vector<8x128xf32>
    %509 = arith.addf %506, %508 : vector<8x128xf32>
    %510 = arith.mulf %509, %8 : vector<8x128xf32>
    %511 = math.tanh %510 : vector<8x128xf32>
    %cst_178 = arith.constant 5.000000e-01 : f32
    %512 = vector.broadcast %cst_178 : f32 to vector<8x128xf32>
    %513 = arith.mulf %512, %511 : vector<8x128xf32>
    %cst_179 = arith.constant 5.000000e-01 : f32
    %514 = vector.broadcast %cst_179 : f32 to vector<8x128xf32>
    %515 = arith.addf %513, %514 : vector<8x128xf32>
    %516 = arith.select %5, %511, %515 : vector<8x128xi1>, vector<8x128xf32>
    %517 = vector.extract_strided_slice %516 {offsets = [0, 0], sizes = [8, 32], strides = [1, 1]} : vector<8x128xf32> to vector<8x32xf32>
    %518 = vector.extract_strided_slice %516 {offsets = [0, 32], sizes = [8, 32], strides = [1, 1]} : vector<8x128xf32> to vector<8x32xf32>
    %519 = vector.extract_strided_slice %516 {offsets = [0, 64], sizes = [8, 32], strides = [1, 1]} : vector<8x128xf32> to vector<8x32xf32>
    %520 = vector.extract_strided_slice %516 {offsets = [0, 96], sizes = [8, 32], strides = [1, 1]} : vector<8x128xf32> to vector<8x32xf32>
    %521 = arith.mulf %518, %473 : vector<8x32xf32>
    %522 = arith.mulf %517, %519 : vector<8x32xf32>
    %523 = arith.addf %521, %522 : vector<8x32xf32>
    %524 = math.tanh %523 : vector<8x32xf32>
    %525 = arith.mulf %520, %524 : vector<8x32xf32>
    %526 = arith.truncf %525 : vector<8x32xf32> to vector<8x32xbf16>
    %c0_180 = arith.constant 0 : index
    %c0_181 = arith.constant 0 : index
    %527 = vector.load %arg7[%c0_180, %c0_181] : memref<32x128xbf16, #tpu.memory_space<vmem>>, vector<32x128xbf16>
    %cst_182 = arith.constant dense<0.000000e+00> : vector<8x128xf32>
    %528 = tpu.matmul %476, %527, %cst_182 {dimension_numbers = #tpu.dot_dimension_numbers<[1], [0], [0], [1], [0, 0, 1, 1], [], []>} : vector<8x32xbf16>, vector<32x128xbf16>, vector<8x128xf32> -> vector<8x128xf32>
    %c0_183 = arith.constant 0 : index
    %c0_184 = arith.constant 0 : index
    %529 = vector.load %arg9[%c0_183, %c0_184] : memref<1x128xf32, #tpu.memory_space<vmem>>, vector<1x128xf32>
    %530 = vector.broadcast %529 : vector<1x128xf32> to vector<8x128xf32>
    %531 = arith.addf %528, %530 : vector<8x128xf32>
    %c0_185 = arith.constant 0 : index
    %c0_186 = arith.constant 0 : index
    %532 = vector.load %arg8[%c0_185, %c0_186] : memref<32x128xbf16, #tpu.memory_space<vmem>>, vector<32x128xbf16>
    %cst_187 = arith.constant dense<0.000000e+00> : vector<8x128xf32>
    %533 = tpu.matmul %501, %532, %cst_187 {dimension_numbers = #tpu.dot_dimension_numbers<[1], [0], [0], [1], [0, 0, 1, 1], [], []>} : vector<8x32xbf16>, vector<32x128xbf16>, vector<8x128xf32> -> vector<8x128xf32>
    %534 = arith.addf %531, %533 : vector<8x128xf32>
    %535 = arith.mulf %534, %8 : vector<8x128xf32>
    %536 = math.tanh %535 : vector<8x128xf32>
    %cst_188 = arith.constant 5.000000e-01 : f32
    %537 = vector.broadcast %cst_188 : f32 to vector<8x128xf32>
    %538 = arith.mulf %537, %536 : vector<8x128xf32>
    %cst_189 = arith.constant 5.000000e-01 : f32
    %539 = vector.broadcast %cst_189 : f32 to vector<8x128xf32>
    %540 = arith.addf %538, %539 : vector<8x128xf32>
    %541 = arith.select %5, %536, %540 : vector<8x128xi1>, vector<8x128xf32>
    %542 = vector.extract_strided_slice %541 {offsets = [0, 0], sizes = [8, 32], strides = [1, 1]} : vector<8x128xf32> to vector<8x32xf32>
    %543 = vector.extract_strided_slice %541 {offsets = [0, 32], sizes = [8, 32], strides = [1, 1]} : vector<8x128xf32> to vector<8x32xf32>
    %544 = vector.extract_strided_slice %541 {offsets = [0, 64], sizes = [8, 32], strides = [1, 1]} : vector<8x128xf32> to vector<8x32xf32>
    %545 = vector.extract_strided_slice %541 {offsets = [0, 96], sizes = [8, 32], strides = [1, 1]} : vector<8x128xf32> to vector<8x32xf32>
    %546 = arith.mulf %543, %498 : vector<8x32xf32>
    %547 = arith.mulf %542, %544 : vector<8x32xf32>
    %548 = arith.addf %546, %547 : vector<8x32xf32>
    %549 = math.tanh %548 : vector<8x32xf32>
    %550 = arith.mulf %545, %549 : vector<8x32xf32>
    %551 = arith.truncf %550 : vector<8x32xf32> to vector<8x32xbf16>
    %c0_190 = arith.constant 0 : index
    %c0_191 = arith.constant 0 : index
    %552 = vector.load %arg7[%c0_190, %c0_191] : memref<32x128xbf16, #tpu.memory_space<vmem>>, vector<32x128xbf16>
    %cst_192 = arith.constant dense<0.000000e+00> : vector<8x128xf32>
    %553 = tpu.matmul %526, %552, %cst_192 {dimension_numbers = #tpu.dot_dimension_numbers<[1], [0], [0], [1], [0, 0, 1, 1], [], []>} : vector<8x32xbf16>, vector<32x128xbf16>, vector<8x128xf32> -> vector<8x128xf32>
    %c0_193 = arith.constant 0 : index
    %c0_194 = arith.constant 0 : index
    %554 = vector.load %arg9[%c0_193, %c0_194] : memref<1x128xf32, #tpu.memory_space<vmem>>, vector<1x128xf32>
    %555 = vector.broadcast %554 : vector<1x128xf32> to vector<8x128xf32>
    %556 = arith.addf %553, %555 : vector<8x128xf32>
    %c0_195 = arith.constant 0 : index
    %c0_196 = arith.constant 0 : index
    %557 = vector.load %arg8[%c0_195, %c0_196] : memref<32x128xbf16, #tpu.memory_space<vmem>>, vector<32x128xbf16>
    %cst_197 = arith.constant dense<0.000000e+00> : vector<8x128xf32>
    %558 = tpu.matmul %551, %557, %cst_197 {dimension_numbers = #tpu.dot_dimension_numbers<[1], [0], [0], [1], [0, 0, 1, 1], [], []>} : vector<8x32xbf16>, vector<32x128xbf16>, vector<8x128xf32> -> vector<8x128xf32>
    %559 = arith.addf %556, %558 : vector<8x128xf32>
    %560 = arith.mulf %559, %8 : vector<8x128xf32>
    %561 = math.tanh %560 : vector<8x128xf32>
    %cst_198 = arith.constant 5.000000e-01 : f32
    %562 = vector.broadcast %cst_198 : f32 to vector<8x128xf32>
    %563 = arith.mulf %562, %561 : vector<8x128xf32>
    %cst_199 = arith.constant 5.000000e-01 : f32
    %564 = vector.broadcast %cst_199 : f32 to vector<8x128xf32>
    %565 = arith.addf %563, %564 : vector<8x128xf32>
    %566 = arith.select %5, %561, %565 : vector<8x128xi1>, vector<8x128xf32>
    %567 = vector.extract_strided_slice %566 {offsets = [0, 0], sizes = [8, 32], strides = [1, 1]} : vector<8x128xf32> to vector<8x32xf32>
    %568 = vector.extract_strided_slice %566 {offsets = [0, 32], sizes = [8, 32], strides = [1, 1]} : vector<8x128xf32> to vector<8x32xf32>
    %569 = vector.extract_strided_slice %566 {offsets = [0, 64], sizes = [8, 32], strides = [1, 1]} : vector<8x128xf32> to vector<8x32xf32>
    %570 = vector.extract_strided_slice %566 {offsets = [0, 96], sizes = [8, 32], strides = [1, 1]} : vector<8x128xf32> to vector<8x32xf32>
    %571 = arith.mulf %568, %548 : vector<8x32xf32>
    %572 = arith.mulf %567, %569 : vector<8x32xf32>
    %573 = arith.addf %571, %572 : vector<8x32xf32>
    %574 = math.tanh %573 : vector<8x32xf32>
    %575 = arith.mulf %570, %574 : vector<8x32xf32>
    %576 = arith.truncf %575 : vector<8x32xf32> to vector<8x32xbf16>
    %c0_200 = arith.constant 0 : index
    %c0_201 = arith.constant 0 : index
    %577 = vector.load %arg10[%c0_200, %c0_201] : memref<32x16xbf16, #tpu.memory_space<vmem>>, vector<32x16xbf16>
    %cst_202 = arith.constant dense<0.000000e+00> : vector<8x16xf32>
    %578 = tpu.matmul %576, %577, %cst_202 {dimension_numbers = #tpu.dot_dimension_numbers<[1], [0], [0], [1], [0, 0, 1, 1], [], []>} : vector<8x32xbf16>, vector<32x16xbf16>, vector<8x16xf32> -> vector<8x16xf32>
    %c0_203 = arith.constant 0 : index
    %c0_204 = arith.constant 0 : index
    %579 = vector.load %arg11[%c0_203, %c0_204] : memref<1x16xf32, #tpu.memory_space<vmem>>, vector<1x16xf32>
    %580 = vector.broadcast %579 : vector<1x16xf32> to vector<8x16xf32>
    %581 = arith.addf %578, %580 : vector<8x16xf32>
    %cst_205 = arith.constant 0.000000e+00 : f32
    %582 = vector.broadcast %cst_205 : f32 to vector<8x16xf32>
    %583 = arith.maximumf %581, %582 : vector<8x16xf32>
    %c0_206 = arith.constant 0 : index
    %c0_207 = arith.constant 0 : index
    %584 = vector.load %arg12[%c0_206, %c0_207] : memref<1x16xf32, #tpu.memory_space<vmem>>, vector<1x16xf32>
    %585 = vector.broadcast %584 : vector<1x16xf32> to vector<8x16xf32>
    %586 = arith.mulf %583, %585 : vector<8x16xf32>
    %cst_208 = arith.constant dense<0.000000e+00> : vector<8xf32>
    %587 = vector.multi_reduction <add>, %586, %cst_208 [1] : vector<8x16xf32> to vector<8xf32>
    %588 = vector.shape_cast %587 : vector<8xf32> to vector<8x1xf32>
    %c0_209 = arith.constant 0 : index
    %c0_210 = arith.constant 0 : index
    %589 = vector.load %arg13[%c0_209, %c0_210] : memref<1x1xf32, #tpu.memory_space<vmem>>, vector<1x1xf32>
    %590 = vector.broadcast %589 : vector<1x1xf32> to vector<8x1xf32>
    %591 = arith.addf %588, %590 : vector<8x1xf32>
    %592 = arith.negf %591 : vector<8x1xf32>
    %593 = math.exp %592 : vector<8x1xf32>
    %cst_211 = arith.constant 1.000000e+00 : f32
    %594 = vector.broadcast %cst_211 : f32 to vector<8x1xf32>
    %595 = arith.addf %594, %593 : vector<8x1xf32>
    %596 = arith.divf %594, %595 : vector<8x1xf32>
    %c0_212 = arith.constant 0 : index
    %c0_213 = arith.constant 0 : index
    %597 = vector.load %arg14[%c0_212, %c0_213] : memref<8x1xf32, #tpu.memory_space<vmem>>, vector<8x1xf32>
    tpu.vector_store %arg14[%c0_212, %c0_213], %596 {strides = array<i32>} : memref<8x1xf32, #tpu.memory_space<vmem>>, vector<8x1xf32>,
    return
  }
}

</mosaic_0001>

<bundles_post_ra>
// kernel: lstm_discriminator_forward.1
= control target key start
LH: loop header
LB: loop body
LE: loop exit
PB: predicated region body
PF: predicated region fallthrough
CT: control target
= control target key end

     0   :  { %vm89_vm0 = vcmask 1041408   ;;  %vm76_vm1 = vcmask 31744   ;;  %v50_v8 = vlaneseq  ;;  %v3241_v13 = vmov 0.5   ;;  %s3242_s24 = smov 64   ;;  %s3243_s25 = smov 32   ;;  %s4052_s1 = inlined_call_operand.vmem [shape: bf16[4,128], index: 1, kind: input, shape index: {}]   ;;  %s4053_s0 = inlined_call_operand.vmem [shape: f32[8,8,4], index: 0, kind: input, shape index: {}]   ;;  %s4054_s3 = inlined_call_operand.vmem [shape: f32[1,128], index: 3, kind: input, shape index: {}]   ;;  %s4055_s2 = inlined_call_operand.vmem [shape: bf16[32,128], index: 2, kind: input, shape index: {}]   ;;  %s4056_s4 = inlined_call_operand.vmem [shape: bf16[32,128], index: 4, kind: input, shape index: {}]   ;;  %s4057_s6 = inlined_call_operand.vmem [shape: f32[1,128], index: 6, kind: input, shape index: {}]   ;;  %s4058_s7 = inlined_call_operand.vmem [shape: bf16[32,128], index: 7, kind: input, shape index: {}]   ;;  %s4059_s5 = inlined_call_operand.vmem [shape: bf16[32,128], index: 5, kind: input, shape index: {}]   ;;  %s4060_s9 = inlined_call_operand.vmem [shape: f32[1,128], index: 9, kind: input, shape index: {}]   ;;  %s4061_s8 = inlined_call_operand.vmem [shape: bf16[32,128], index: 8, kind: input, shape index: {}]   ;;  %s4062_s10 = inlined_call_operand.vmem [shape: bf16[32,16], index: 10, kind: input, shape index: {}]   ;;  %s4063_s13 = inlined_call_operand.<no memory space> [shape: f32[1,1], index: 13, kind: input, shape index: {}]   ;;  %s4064_s11 = inlined_call_operand.vmem [shape: f32[1,16], index: 11, kind: input, shape index: {}]   ;;  %s4065_s12 = inlined_call_operand.vmem [shape: f32[1,16], index: 12, kind: input, shape index: {}]   ;;  %s4066_s14 = inlined_call_operand.vmem [shape: f32[8,1], index: 14, kind: output, shape index: {}]  }
   0x1   :  { %v68_v0 = vld [vmem:[%s4052_s1] sm:$0x3]  ;;  %v57_v2 = vld [vmem:[%s4053_s0 + $0x8] sm:$0xff]  ;;  %v58_v5 = vld [vmem:[%s4053_s0 + $0x10] sm:$0xff]  ;;  %v3244_v29 = vmov 0.0   ;;  %vm3245_vm5 = vmmov 0  }
   0x2   :  { %v56_v1 = vld [vmem:[%s4053_s0] sm:$0xff]  ;;  %3110 = vmatprep.subr.msk.bf16.mxu0 %vm89_vm0, %v68_v0  ;;  %v91_v3 = vsel %vm89_vm0, %v68_v0, 0  ;;  %v59_v6 = vld [vmem:[%s4053_s0 + $0x18] sm:$0xff]  ;;  %v51_v9 = vand.u32 127, %v50_v8  ;;  %2736 = vmatprep.subr.bf16.mxu1 %v3244_v29  ;;  %v3377_v31 = vld [vmem:[%s4055_s2 + $0x8] sm:$0xff]   ;;  %vm200_vm6 = vcmask 261120  }
   0x3   :  { %v64_v4 = vpack.c.bf16 %v57_v2, %v56_v1  ;;  %2727 = vmatpush3.bf16.msra.mxu0 %v91_v3  ;;  %v65_v7 = vpack.c.bf16 %v59_v6, %v58_v5  ;;  %v3345_v11 = vld [vmem:[%s4054_s3] ss:$0 sm:$0xff]  ;;  %2740 = vmatprep.mubr.msk.bf16.mxu1 %vm3245_vm5, %v3244_v29  ;;  %v3398_v38 = vld [vmem:[%s4056_s4 + $0x8] sm:$0xff]   ;;  %vm2522_vm7 = vcmask 130048   ;;  %vm2540_vm8 = vcmask 7168  }
   0x4   :  { %vm52_vm2 = vcmp.ge.s32.totalorder %v51_v9, 64  ;;  %vm53_vm3 = vcmp.lt.s32.totalorder %v51_v9, 96  ;;  %v3368_v30 = vld [vmem:[%s4055_s2] sm:$0xff]   ;;  %2752 = vmatprep.subr.bf16.mxu0 %v3244_v29  ;;  %v61_v9 = vld [vmem:[%s4053_s0 + $0x28] sm:$0xff] }
   0x5   :  { %2728 = vmatprep.mubr.msk.bf16.mxu0 %vm76_vm1, %v64_v4  ;;  %vm3338_vm4 = vmand %vm52_vm2, %vm53_vm3  ;;  %2737 = vmatpush3.bf16.msra.mxu1 %v3368_v30  ;;  %v3391_v36 = vld [vmem:[%s4056_s4] sm:$0xff]   ;;  %v3127_v10 = vld [vmem:[%s4062_s10 + $0x8] sm:$0xff]  }
   0x6   :  { %2729 = vmatmul.mubr.msk.bf16.vlgmr.msra.gmra.mrb[0].mxu0 %vm76_vm1, %v65_v7  ;;  %v3351_v14 = vsel %vm3338_vm4, 1.0, %v3241_v13  ;;  %2738 = vmatprep.subr.bf16.mxu1 %v3244_v29  ;;  %v3417_v46 = vld [vmem:[%s4057_s6] ss:$0 sm:$0xff]  ;;  %v62_v13 = vld [vmem:[%s4053_s0 + $0x30] sm:$0xff] }
   0x7   :  { %2753 = vmatpush3.bf16.msra.mxu0 %v3368_v30  ;;  %v60_v8 = vld [vmem:[%s4053_s0 + $0x20] sm:$0xff] }
   0x8   :  { %2754 = vmatprep.subr.bf16.mxu0 %v3244_v29 }
   0x9   :  { %2739 = vmatpush3.bf16.msra.mxu1 %v3377_v31 }
   0xa   :  { %2744 = vmatprep.subr.bf16.mxu1 %v3244_v29 }
   0xb   :  { %2755 = vmatpush3.bf16.msra.mxu0 %v3377_v31 }
   0xc   :  { %2776 = vmatprep.subr.bf16.mxu0 %v3244_v29 }
  0xd9   :  { %v3347_v12 = vpop.f32.mrb[0].mxu0 }
  0xda   :  { %v127_v15 = vpop.f32.mrb[1].mxu0 }
  0xdb   :  { %v128_v16 = vadd.f32 %v3345_v11, %v127_v15  ;;  %v3354_v17 = vpop.f32.mrb[2].mxu0  ;;  %v66_v15 = vpack.c.bf16 %v61_v9, %v60_v8 }
  0xdc   :  { %v130_v18 = vpop.f32.mrb[3].mxu0 }
  0xdd   :  { %v158_v19 = vmul.f32 %v128_v16, %v3351_v14  ;;  %v131_v39 = vadd.f32 %v3345_v11, %v130_v18  ;;  %v63_v16 = vld [vmem:[%s4053_s0 + $0x38] sm:$0xff]  ;;  %2732 = vmatprep.mubr.msk.bf16.mxu0 %vm76_vm1, %v66_v15 }
  0xde   :  { %v67_v18 = vpack.c.bf16 %v63_v16, %v62_v13 }
  0xdf   :  { %3128 = vtanh.f32 %v158_v19 }
  0xe0   :  { %2733 = vmatmul.mubr.msk.bf16.gmra.mrb[4].mxu0 %vm76_vm1, %v67_v18 }
  0xe1   :  { %2756 = vmatprep.mubr.msk.bf16.mxu0 %vm3245_vm5, %v3244_v29 }
  0xe9   :  { %v3129_v20 = vpop.eup %3128 }
  0xea   :  { %v160_v21 = vmul.f32 0.5, %v3129_v20 }
  0xec   :  { %v161_v22 = vadd.f32 0.5, %v160_v21 }
  0xee   :  { %v162_v23 = vsel %vm3338_vm4, %v3129_v20, %v161_v22 }
  0xef   :  { %165 = vrot.lane.b32.xlu0 %v162_v23, %s3242_s24  ;;  %v163_v26 = vmul.f32 0.0, %v162_v23 }
 0x161   :  { %v166_v24 = vpop.permute.xlu0 %165 }
 0x162   :  { %v168_v25 = vmul.f32 %v166_v24, %v162_v23 }
 0x164   :  { %170 = vrot.lane.b32.xlu0 %v168_v25, %s3243_s25 }
 0x1d6   :  { %v171_v27 = vpop.permute.xlu0 %170 }
 0x1d7   :  { %v3361_v28 = vadd.f32 %v171_v27, %v163_v26  ;;  %v3456_v26 = vpop.f32.mrb[4].mxu0 }
 0x1d8   :  { %v3458_v27 = vpop.f32.mrb[5].mxu0 }
 0x1d9   :  { %3130 = vtanh.f32 %v3361_v28 }
 0x1e3   :  { %v3131_v32 = vpop.eup %3130 }
 0x1e4   :  { %176 = vrot.lane.b32.xlu1 %v3131_v32, %s3242_s24 }
 0x256   :  { %v177_v33 = vpop.permute.xlu1 %176 }
 0x257   :  { %v179_v34 = vmul.f32 %v177_v33, %v162_v23  ;;  %v3467_v33 = vld [vmem:[%s4059_s5] sm:$0xff]  }
 0x259   :  { %v180_v35 = vpack.c.bf16 %v179_v34, %v179_v34  ;;  %v3472_v34 = vld [vmem:[%s4058_s7] sm:$0xff]  }
 0x25b   :  { %186 = vrot.lane.b32.xlu1 %v180_v35, %s3243_s25 }
 0x2cd   :  { %v187_v37 = vpop.permute.xlu1 %186 }
 0x2ce   :  { %2741 = vmatmul.mubr.msk.bf16.vlgmr.msra.gmra.mrb[0].mxu1 %vm200_vm6, %v187_v37 }
 0x2cf   :  { %2745 = vmatpush3.bf16.msra.mxu1 %v3391_v36  ;;  %2748 = vmatprep.mubr.msk.bf16.mxu1 %vm3245_vm5, %v3244_v29 }
 0x2d0   :  { %2746 = vmatprep.subr.bf16.mxu1 %v3244_v29 }
 0x2d3   :  { %2747 = vmatpush3.bf16.msra.mxu1 %v3398_v38 }
 0x2d4   :  { %2760 = vmatprep.subr.bf16.mxu1 %v3244_v29 }
 0x2d6   :  { %2749 = vmatmul.mubr.msk.bf16.vlgmr.msra.gmra.mrb[4].mxu1 %vm200_vm6, %v187_v37  ;;  %v3481_v37 = vld [vmem:[%s4058_s7 + $0x8] sm:$0xff]  }
 0x2d7   :  { %2761 = vmatpush3.bf16.msra.mxu1 %v3391_v36  ;;  %2764 = vmatprep.mubr.msk.bf16.mxu1 %vm3245_vm5, %v3244_v29 }
 0x2d8   :  { %2762 = vmatprep.subr.bf16.mxu1 %v3244_v29 }
 0x2db   :  { %2763 = vmatpush3.bf16.msra.mxu1 %v3398_v38 }
 0x2dc   :  { %2768 = vmatprep.subr.bf16.mxu1 %v3244_v29 }
 0x3a1   :  { %v238_v40 = vpop.f32.mrb[0].mxu1 }
 0x3a2   :  { %v244_v41 = vadd.f32 %v238_v40, %v131_v39  ;;  %v2742_v42 = vpop.f32.mrb[1].mxu1  ;;  %v3486_v39 = vld [vmem:[%s4059_s5 + $0x8] sm:$0xff]  }
 0x3a3   :  { %v241_v43 = vpop.f32.mrb[2].mxu1 }
 0x3a4   :  { %v245_v44 = vmul.f32 %v244_v41, %v3351_v14  ;;  %v2743_v45 = vpop.f32.mrb[3].mxu1  ;;  %v136_v41 = vadd.f32 %v3347_v12, %v3345_v11 }
 0x3a6   :  { %3132 = vtanh.f32 %v245_v44 }
 0x3a9   :  { %v325_v47 = vpop.f32.mrb[4].mxu1 }
 0x3aa   :  { %v326_v48 = vadd.f32 %v3417_v46, %v325_v47  ;;  %v2750_v49 = vpop.f32.mrb[5].mxu1 }
 0x3ab   :  { %v328_v50 = vpop.f32.mrb[6].mxu1  ;;  %v3518_v49 = vld [vmem:[%s4060_s9] ss:$0 sm:$0xff] }
 0x3ac   :  { %v331_v51 = vmul.f32 %v326_v48, %v3351_v14  ;;  %v2751_v52 = vpop.f32.mrb[7].mxu1 }
 0x3ae   :  { %3134 = vtanh.f32 %v331_v51 }
 0x3b0   :  { %v3133_v53 = vpop.eup %3132 }
 0x3b1   :  { %v247_v54 = vmul.f32 0.5, %v3133_v53 }
 0x3b3   :  { %v248_v55 = vadd.f32 0.5, %v247_v54 }
 0x3b5   :  { %v249_v56 = vsel %vm3338_vm4, %v3133_v53, %v248_v55 }
 0x3b6   :  { %252 = vrot.lane.b32.xlu0 %v249_v56, %s3242_s24  ;;  %v250_v1 = vmul.f32 %v249_v56, %v3361_v28  ;;  %v3460_v28 = vpop.f32.mrb[6].mxu0 }
 0x3b7   :  { %v3462_v32 = vpop.f32.mrb[7].mxu0 }
 0x3b8   :  { %v3135_v57 = vpop.eup %3134 }
 0x3b9   :  { %v333_v58 = vmul.f32 0.5, %v3135_v57 }
 0x3bb   :  { %v334_v59 = vadd.f32 0.5, %v333_v58 }
 0x3bd   :  { %v335_v60 = vsel %vm3338_vm4, %v3135_v57, %v334_v59 }
 0x3be   :  { %338 = vrot.lane.b32.xlu1 %v335_v60, %s3242_s24  ;;  %v336_v4 = vmul.f32 0.0, %v335_v60 }
 0x428   :  { %v253_v61 = vpop.permute.xlu0 %252 }
 0x429   :  { %v255_v62 = vmul.f32 %v253_v61, %v249_v56 }
 0x42b   :  { %257 = vrot.lane.b32.xlu0 %v255_v62, %s3243_s25 }
 0x430   :  { %v339_v63 = vpop.permute.xlu1 %338 }
 0x431   :  { %v341_v0 = vmul.f32 %v339_v63, %v335_v60 }
 0x433   :  { %343 = vrot.lane.b32.xlu1 %v341_v0, %s3243_s25 }
 0x49d   :  { %v258_v2 = vpop.permute.xlu0 %257 }
 0x49e   :  { %v3430_v3 = vadd.f32 %v258_v2, %v250_v1 }
 0x4a0   :  { %3136 = vtanh.f32 %v3430_v3 }
 0x4a5   :  { %v344_v5 = vpop.permute.xlu1 %343 }
 0x4a6   :  { %v3433_v6 = vadd.f32 %v344_v5, %v336_v4 }
 0x4a8   :  { %3138 = vtanh.f32 %v3433_v6 }
 0x4aa   :  { %v3137_v7 = vpop.eup %3136 }
 0x4ab   :  { %263 = vrot.lane.b32.xlu0 %v3137_v7, %s3242_s24 }
 0x4b2   :  { %v3139_v19 = vpop.eup %3138 }
 0x4b3   :  { %349 = vrot.lane.b32.xlu1 %v3139_v19, %s3242_s24 }
 0x51d   :  { %v264_v20 = vpop.permute.xlu0 %263 }
 0x51e   :  { %v266_v21 = vmul.f32 %v264_v20, %v249_v56 }
 0x520   :  { %v267_v22 = vpack.c.bf16 %v266_v21, %v266_v21 }
 0x522   :  { %355 = vrot.lane.b32.xlu0 %v267_v22, %s3243_s25 }
 0x525   :  { %v350_v23 = vpop.permute.xlu1 %349 }
 0x526   :  { %v352_v24 = vmul.f32 %v350_v23, %v335_v60 }
 0x528   :  { %v353_v25 = vpack.c.bf16 %v352_v24, %v352_v24 }
 0x52a   :  { %469 = vrot.lane.b32.xlu1 %v353_v25, %s3243_s25 }
 0x594   :  { %v356_v35 = vpop.permute.xlu0 %355 }
 0x595   :  { %2757 = vmatmul.mubr.msk.bf16.vlgmr.msra.gmra.mrb[8].mxu0 %vm200_vm6, %v356_v35  ;;  %2765 = vmatmul.mubr.msk.bf16.vlgmr.msra.gmra.mrb[8].mxu1 %vm200_vm6, %v356_v35 }
 0x596   :  { %2769 = vmatpush3.bf16.msra.mxu1 %v3467_v33  ;;  %2777 = vmatpush3.bf16.msra.mxu0 %v3472_v34 }
 0x597   :  { %2778 = vmatprep.subr.bf16.mxu0 %v3244_v29  ;;  %2770 = vmatprep.subr.bf16.mxu1 %v3244_v29 }
 0x598   :  { %2780 = vmatprep.mubr.msk.bf16.mxu0 %vm3245_vm5, %v3244_v29  ;;  %2772 = vmatprep.mubr.msk.bf16.mxu1 %vm3245_vm5, %v3244_v29 }
 0x59a   :  { %2779 = vmatpush3.bf16.msra.mxu0 %v3481_v37  ;;  %2771 = vmatpush3.bf16.msra.mxu1 %v3486_v39 }
 0x59b   :  { %2784 = vmatprep.subr.bf16.mxu0 %v3244_v29  ;;  %2792 = vmatprep.subr.bf16.mxu1 %v3244_v29 }
 0x59c   :  { %v470_v40 = vpop.permute.xlu1 %469 }
 0x59d   :  { %2781 = vmatmul.mubr.msk.bf16.vlgmr.msra.gmra.mrb[12].mxu0 %vm200_vm6, %v470_v40 }
 0x59e   :  { %2785 = vmatpush3.bf16.msra.mxu0 %v3368_v30  ;;  %2788 = vmatprep.mubr.msk.bf16.mxu0 %vm3245_vm5, %v3244_v29 }
 0x59f   :  { %2786 = vmatprep.subr.bf16.mxu0 %v3244_v29 }
 0x5a1   :  { %2773 = vmatmul.mubr.msk.bf16.vlgmr.msra.gmra.mrb[8].mxu1 %vm200_vm6, %v470_v40 }
 0x5a2   :  { %2793 = vmatpush3.bf16.msra.mxu1 %v3391_v36  ;;  %2787 = vmatpush3.bf16.msra.mxu0 %v3377_v31 }
 0x5a3   :  { %2794 = vmatprep.subr.bf16.mxu1 %v3244_v29  ;;  %2796 = vmatprep.mubr.msk.bf16.mxu1 %vm3245_vm5, %v3244_v29 }
 0x5a4   :  { %2808 = vmatprep.subr.bf16.mxu0 %v3244_v29 }
 0x5a6   :  { %2795 = vmatpush3.bf16.msra.mxu1 %v3398_v38 }
 0x5a7   :  { %2800 = vmatprep.subr.bf16.mxu1 %v3244_v29 }
 0x668   :  { %v394_v42 = vpop.f32.mrb[8].mxu0 }
 0x669   :  { %v400_v43 = vadd.f32 %v394_v42, %v136_v41  ;;  %v2758_v44 = vpop.f32.mrb[9].mxu0 }
 0x66a   :  { %v397_v45 = vpop.f32.mrb[10].mxu0 }
 0x66b   :  { %v401_v47 = vmul.f32 %v400_v43, %v3351_v14  ;;  %v2759_v48 = vpop.f32.mrb[11].mxu0 }
 0x66d   :  { %3140 = vtanh.f32 %v401_v47 }
 0x670   :  { %v607_v50 = vpop.f32.mrb[12].mxu0 }
 0x671   :  { %v608_v51 = vadd.f32 %v3518_v49, %v607_v50  ;;  %v2782_v52 = vpop.f32.mrb[13].mxu0 }
 0x672   :  { %v610_v53 = vpop.f32.mrb[14].mxu0 }
 0x673   :  { %v613_v12 = vmul.f32 %v608_v51, %v3351_v14  ;;  %v2783_v54 = vpop.f32.mrb[15].mxu0 }
 0x674   :  { %v520_v55 = vpop.f32.mrb[8].mxu1 }
 0x675   :  { %3142 = vtanh.f32 %v613_v12  ;;  %v3040_v56 = vadd.f32 %v3417_v46, %v520_v55  ;;  %v2774_v57 = vpop.f32.mrb[9].mxu1 }
 0x676   :  { %v523_v58 = vpop.f32.mrb[10].mxu1 }
 0x677   :  { %v3141_v59 = vpop.eup %3140  ;;  %v527_v60 = vmul.f32 %v3040_v56, %v3351_v14  ;;  %v2775_v61 = vpop.f32.mrb[11].mxu1  ;;  %v3570_v56 = vld [vmem:[%s4061_s8] sm:$0xff]   ;;  %v3578_v58 = vld [vmem:[%s4061_s8 + $0x8] sm:$0xff]  }
 0x678   :  { %v403_v62 = vmul.f32 0.5, %v3141_v59 }
 0x679   :  { %3144 = vtanh.f32 %v527_v60  ;;  %v139_v60 = vadd.f32 %v3354_v17, %v3345_v11 }
 0x67a   :  { %v404_v63 = vadd.f32 0.5, %v403_v62 }
 0x67c   :  { %v405_v0 = vsel %vm3338_vm4, %v3141_v59, %v404_v63 }
 0x67d   :  { %408 = vrot.lane.b32.xlu0 %v405_v0, %s3242_s24  ;;  %v406_v22 = vmul.f32 %v405_v0, %v3430_v3 }
 0x67f   :  { %v3143_v1 = vpop.eup %3142 }
 0x680   :  { %v615_v2 = vmul.f32 0.5, %v3143_v1 }
 0x682   :  { %v616_v4 = vadd.f32 0.5, %v615_v2 }
 0x683   :  { %v3145_v5 = vpop.eup %3144 }
 0x684   :  { %v617_v7 = vsel %vm3338_vm4, %v3143_v1, %v616_v4  ;;  %v529_v8 = vmul.f32 0.5, %v3145_v5 }
 0x685   :  { %620 = vrot.lane.b32.xlu0 %v617_v7, %s3242_s24  ;;  %v618_v25 = vmul.f32 0.0, %v617_v7 }
 0x686   :  { %v530_v9 = vadd.f32 0.5, %v529_v8 }
 0x688   :  { %v531_v13 = vsel %vm3338_vm4, %v3145_v5, %v530_v9 }
 0x689   :  { %534 = vrot.lane.b32.xlu1 %v531_v13, %s3242_s24  ;;  %v532_v41 = vmul.f32 %v531_v13, %v3433_v6 }
 0x6ef   :  { %v409_v15 = vpop.permute.xlu0 %408 }
 0x6f0   :  { %v411_v16 = vmul.f32 %v409_v15, %v405_v0 }
 0x6f2   :  { %413 = vrot.lane.b32.xlu1 %v411_v16, %s3243_s25 }
 0x6f7   :  { %v621_v18 = vpop.permute.xlu0 %620 }
 0x6f8   :  { %v623_v19 = vmul.f32 %v621_v18, %v617_v7 }
 0x6fa   :  { %625 = vrot.lane.b32.xlu1 %v623_v19, %s3243_s25 }
 0x6fb   :  { %v535_v20 = vpop.permute.xlu1 %534 }
 0x6fc   :  { %v537_v21 = vmul.f32 %v535_v20, %v531_v13 }
 0x6fe   :  { %539 = vrot.lane.b32.xlu0 %v537_v21, %s3243_s25 }
 0x764   :  { %v414_v23 = vpop.permute.xlu1 %413 }
 0x765   :  { %v3537_v24 = vadd.f32 %v414_v23, %v406_v22 }
 0x767   :  { %3146 = vtanh.f32 %v3537_v24 }
 0x76c   :  { %v626_v35 = vpop.permute.xlu1 %625 }
 0x76d   :  { %v3540_v40 = vadd.f32 %v626_v35, %v618_v25 }
 0x76f   :  { %3148 = vtanh.f32 %v3540_v40 }
 0x770   :  { %v540_v42 = vpop.permute.xlu0 %539 }
 0x771   :  { %v3147_v43 = vpop.eup %3146  ;;  %v3544_v44 = vadd.f32 %v540_v42, %v532_v41 }
 0x772   :  { %419 = vrot.lane.b32.xlu0 %v3147_v43, %s3242_s24 }
 0x773   :  { %3150 = vtanh.f32 %v3544_v44 }
 0x779   :  { %v3149_v3 = vpop.eup %3148 }
 0x77a   :  { %631 = vrot.lane.b32.xlu0 %v3149_v3, %s3242_s24 }
 0x77d   :  { %v3151_v45 = vpop.eup %3150 }
 0x77e   :  { %545 = vrot.lane.b32.xlu1 %v3151_v45, %s3242_s24 }
 0x7e4   :  { %v420_v47 = vpop.permute.xlu0 %419 }
 0x7e5   :  { %v422_v48 = vmul.f32 %v420_v47, %v405_v0 }
 0x7e7   :  { %v423_v50 = vpack.c.bf16 %v422_v48, %v422_v48 }
 0x7e9   :  { %637 = vrot.lane.b32.xlu1 %v423_v50, %s3243_s25 }
 0x7ec   :  { %v632_v6 = vpop.permute.xlu0 %631 }
 0x7ed   :  { %v634_v51 = vmul.f32 %v632_v6, %v617_v7 }
 0x7ef   :  { %v635_v52 = vpack.c.bf16 %v634_v51, %v634_v51 }
 0x7f0   :  { %v546_v53 = vpop.permute.xlu1 %545 }
 0x7f1   :  { %v548_v12 = vmul.f32 %v546_v53, %v531_v13  ;;  %861 = vrot.lane.b32.xlu1 %v635_v52, %s3243_s25 }
 0x7f3   :  { %v549_v54 = vpack.c.bf16 %v548_v12, %v548_v12 }
 0x7f5   :  { %747 = vrot.lane.b32.xlu0 %v549_v54, %s3243_s25 }
 0x85b   :  { %v638_v55 = vpop.permute.xlu1 %637 }
 0x85c   :  { %2789 = vmatmul.mubr.msk.bf16.vlgmr.msra.gmra.mrb[16].mxu0 %vm200_vm6, %v638_v55  ;;  %2797 = vmatmul.mubr.msk.bf16.vlgmr.msra.gmra.mrb[12].mxu1 %vm200_vm6, %v638_v55 }
 0x85d   :  { %2801 = vmatpush3.bf16.msra.mxu1 %v3467_v33  ;;  %2809 = vmatpush3.bf16.msra.mxu0 %v3472_v34 }
 0x85e   :  { %2802 = vmatprep.subr.bf16.mxu1 %v3244_v29  ;;  %2810 = vmatprep.subr.bf16.mxu0 %v3244_v29 }
 0x85f   :  { %2804 = vmatprep.mubr.msk.bf16.mxu1 %vm3245_vm5, %v3244_v29  ;;  %2812 = vmatprep.mubr.msk.bf16.mxu0 %vm3245_vm5, %v3244_v29 }
 0x861   :  { %2803 = vmatpush3.bf16.msra.mxu1 %v3486_v39  ;;  %2811 = vmatpush3.bf16.msra.mxu0 %v3481_v37 }
 0x862   :  { %2816 = vmatprep.subr.bf16.mxu0 %v3244_v29  ;;  %2824 = vmatprep.subr.bf16.mxu1 %v3244_v29 }
 0x863   :  { %v862_v59 = vpop.permute.xlu1 %861 }
 0x867   :  { %v748_v57 = vpop.permute.xlu0 %747 }
 0x868   :  { %2805 = vmatmul.mubr.msk.bf16.vlgmr.msra.gmra.mrb[12].mxu1 %vm200_vm6, %v748_v57  ;;  %2813 = vmatmul.mubr.msk.bf16.vlgmr.msra.gmra.mrb[20].mxu0 %vm200_vm6, %v748_v57 }
 0x869   :  { %2817 = vmatpush3.bf16.msra.mxu0 %v3570_v56  ;;  %2820 = vmatprep.mubr.msk.bf16.mxu0 %vm3245_vm5, %v3244_v29 }
 0x86a   :  { %2818 = vmatprep.subr.bf16.mxu0 %v3244_v29  ;;  %2825 = vmatpush3.bf16.msra.mxu1 %v3368_v30 }
 0x86b   :  { %2826 = vmatprep.subr.bf16.mxu1 %v3244_v29  ;;  %2828 = vmatprep.mubr.msk.bf16.mxu1 %vm3245_vm5, %v3244_v29 }
 0x86d   :  { %2819 = vmatpush3.bf16.msra.mxu0 %v3578_v58 }
 0x86e   :  { %2832 = vmatprep.subr.bf16.mxu0 %v3244_v29  ;;  %2827 = vmatpush3.bf16.msra.mxu1 %v3377_v31 }
 0x86f   :  { %2848 = vmatprep.subr.bf16.mxu1 %v3244_v29 }
 0x874   :  { %2821 = vmatmul.mubr.msk.bf16.vlgmr.msra.gmra.mrb[20].mxu0 %vm200_vm6, %v862_v59 }
 0x875   :  { %2833 = vmatpush3.bf16.msra.mxu0 %v3391_v36  ;;  %2836 = vmatprep.mubr.msk.bf16.mxu0 %vm3245_vm5, %v3244_v29 }
 0x876   :  { %2834 = vmatprep.subr.bf16.mxu0 %v3244_v29 }
 0x879   :  { %2835 = vmatpush3.bf16.msra.mxu0 %v3398_v38 }
 0x87a   :  { %2840 = vmatprep.subr.bf16.mxu0 %v3244_v29 }
 0x92f   :  { %v676_v61 = vpop.f32.mrb[16].mxu0 }
 0x930   :  { %v682_v62 = vadd.f32 %v676_v61, %v139_v60  ;;  %v2790_v63 = vpop.f32.mrb[17].mxu0 }
 0x931   :  { %v679_v0 = vpop.f32.mrb[18].mxu0 }
 0x932   :  { %v683_v1 = vmul.f32 %v682_v62, %v3351_v14  ;;  %v2791_v2 = vpop.f32.mrb[19].mxu0 }
 0x934   :  { %3152 = vtanh.f32 %v683_v1 }
 0x93b   :  { %v786_v4 = vpop.f32.mrb[12].mxu1 }
 0x93c   :  { %v3041_v5 = vadd.f32 %v3417_v46, %v786_v4  ;;  %v2806_v7 = vpop.f32.mrb[13].mxu1 }
 0x93d   :  { %v789_v8 = vpop.f32.mrb[14].mxu1 }
 0x93e   :  { %v3153_v9 = vpop.eup %3152  ;;  %v793_v13 = vmul.f32 %v3041_v5, %v3351_v14  ;;  %v2807_v15 = vpop.f32.mrb[15].mxu1 }
 0x93f   :  { %v685_v16 = vmul.f32 0.5, %v3153_v9 }
 0x940   :  { %3154 = vtanh.f32 %v793_v13 }
 0x941   :  { %v686_v17 = vadd.f32 0.5, %v685_v16 }
 0x943   :  { %v687_v18 = vsel %vm3338_vm4, %v3153_v9, %v686_v17 }
 0x944   :  { %690 = vrot.lane.b32.xlu0 %v687_v18, %s3242_s24  ;;  %v688_v54 = vmul.f32 %v687_v18, %v3537_v24 }
 0x947   :  { %v912_v19 = vpop.f32.mrb[20].mxu0 }
 0x948   :  { %v3042_v20 = vadd.f32 %v3518_v49, %v912_v19  ;;  %v2822_v21 = vpop.f32.mrb[21].mxu0  ;;  %v144_v19 = vadd.f32 %v3345_v11, %v3458_v27 }
 0x949   :  { %v915_v22 = vpop.f32.mrb[22].mxu0 }
 0x94a   :  { %v3155_v23 = vpop.eup %3154  ;;  %v919_v25 = vmul.f32 %v3042_v20, %v3351_v14  ;;  %v2823_v35 = vpop.f32.mrb[23].mxu0 }
 0x94b   :  { %v795_v41 = vmul.f32 0.5, %v3155_v23 }
 0x94c   :  { %3156 = vtanh.f32 %v919_v25 }
 0x94d   :  { %v796_v42 = vadd.f32 0.5, %v795_v41 }
 0x94f   :  { %v797_v43 = vsel %vm3338_vm4, %v3155_v23, %v796_v42 }
 0x950   :  { %800 = vrot.lane.b32.xlu1 %v797_v43, %s3242_s24  ;;  %v798_v59 = vmul.f32 %v797_v43, %v3544_v44 }
 0x956   :  { %v3157_v3 = vpop.eup %3156 }
 0x957   :  { %v921_v45 = vmul.f32 0.5, %v3157_v3 }
 0x959   :  { %v922_v47 = vadd.f32 0.5, %v921_v45 }
 0x95b   :  { %v923_v48 = vsel %vm3338_vm4, %v3157_v3, %v922_v47 }
 0x95c   :  { %926 = vrot.lane.b32.xlu0 %v923_v48, %s3242_s24  ;;  %v924_v63 = vmul.f32 %v923_v48, %v3540_v40 }
 0x9b6   :  { %v691_v50 = vpop.permute.xlu0 %690 }
 0x9b7   :  { %v693_v6 = vmul.f32 %v691_v50, %v687_v18 }
 0x9b9   :  { %695 = vrot.lane.b32.xlu1 %v693_v6, %s3243_s25 }
 0x9c2   :  { %v801_v51 = vpop.permute.xlu1 %800 }
 0x9c3   :  { %v803_v52 = vmul.f32 %v801_v51, %v797_v43 }
 0x9c5   :  { %805 = vrot.lane.b32.xlu0 %v803_v52, %s3243_s25 }
 0x9ce   :  { %v927_v53 = vpop.permute.xlu0 %926 }
 0x9cf   :  { %v929_v12 = vmul.f32 %v927_v53, %v923_v48 }
 0x9d1   :  { %931 = vrot.lane.b32.xlu1 %v929_v12, %s3243_s25 }
 0xa2b   :  { %v696_v55 = vpop.permute.xlu1 %695 }
 0xa2c   :  { %v3618_v57 = vadd.f32 %v696_v55, %v688_v54 }
 0xa2e   :  { %3158 = vtanh.f32 %v3618_v57 }
 0xa37   :  { %v806_v60 = vpop.permute.xlu0 %805 }
 0xa38   :  { %v3159_v61 = vpop.eup %3158  ;;  %v3622_v62 = vadd.f32 %v806_v60, %v798_v59 }
 0xa39   :  { %701 = vrot.lane.b32.xlu0 %v3159_v61, %s3242_s24 }
 0xa3a   :  { %3160 = vtanh.f32 %v3622_v62 }
 0xa43   :  { %v932_v0 = vpop.permute.xlu1 %931 }
 0xa44   :  { %v3161_v1 = vpop.eup %3160  ;;  %v3627_v24 = vadd.f32 %v932_v0, %v924_v63 }
 0xa45   :  { %811 = vrot.lane.b32.xlu1 %v3161_v1, %s3242_s24 }
 0xa46   :  { %3162 = vtanh.f32 %v3627_v24 }
 0xa50   :  { %v3163_v2 = vpop.eup %3162 }
 0xa51   :  { %937 = vrot.lane.b32.xlu0 %v3163_v2, %s3242_s24 }
 0xaab   :  { %v702_v44 = vpop.permute.xlu0 %701 }
 0xaac   :  { %v704_v4 = vmul.f32 %v702_v44, %v687_v18 }
 0xaae   :  { %v705_v5 = vpack.c.bf16 %v704_v4, %v704_v4 }
 0xab0   :  { %943 = vrot.lane.b32.xlu1 %v705_v5, %s3243_s25 }
 0xab7   :  { %v812_v7 = vpop.permute.xlu1 %811 }
 0xab8   :  { %v814_v8 = vmul.f32 %v812_v7, %v797_v43 }
 0xaba   :  { %v815_v9 = vpack.c.bf16 %v814_v8, %v814_v8 }
 0xabc   :  { %1053 = vrot.lane.b32.xlu0 %v815_v9, %s3243_s25 }
 0xac3   :  { %v938_v40 = vpop.permute.xlu0 %937 }
 0xac4   :  { %v940_v13 = vmul.f32 %v938_v40, %v923_v48 }
 0xac6   :  { %v941_v15 = vpack.c.bf16 %v940_v13, %v940_v13 }
 0xac8   :  { %1163 = vrot.lane.b32.xlu1 %v941_v15, %s3243_s25 }
 0xb22   :  { %v944_v16 = vpop.permute.xlu1 %943 }
 0xb23   :  { %2829 = vmatmul.mubr.msk.bf16.vlgmr.msra.gmra.mrb[16].mxu1 %vm200_vm6, %v944_v16  ;;  %2837 = vmatmul.mubr.msk.bf16.vlgmr.msra.gmra.mrb[24].mxu0 %vm200_vm6, %v944_v16 }
 0xb24   :  { %2841 = vmatpush3.bf16.msra.mxu0 %v3467_v33  ;;  %2849 = vmatpush3.bf16.msra.mxu1 %v3472_v34 }
 0xb25   :  { %2842 = vmatprep.subr.bf16.mxu0 %v3244_v29  ;;  %2850 = vmatprep.subr.bf16.mxu1 %v3244_v29 }
 0xb26   :  { %2844 = vmatprep.mubr.msk.bf16.mxu0 %vm3245_vm5, %v3244_v29  ;;  %2852 = vmatprep.mubr.msk.bf16.mxu1 %vm3245_vm5, %v3244_v29 }
 0xb28   :  { %2843 = vmatpush3.bf16.msra.mxu0 %v3486_v39  ;;  %2851 = vmatpush3.bf16.msra.mxu1 %v3481_v37 }
 0xb29   :  { %2856 = vmatprep.subr.bf16.mxu1 %v3244_v29  ;;  %2864 = vmatprep.subr.bf16.mxu0 %v3244_v29 }
 0xb2e   :  { %v1054_v17 = vpop.permute.xlu0 %1053 }
 0xb2f   :  { %2845 = vmatmul.mubr.msk.bf16.vlgmr.msra.gmra.mrb[24].mxu0 %vm200_vm6, %v1054_v17  ;;  %2853 = vmatmul.mubr.msk.bf16.vlgmr.msra.gmra.mrb[20].mxu1 %vm200_vm6, %v1054_v17 }
 0xb30   :  { %2857 = vmatpush3.bf16.msra.mxu1 %v3570_v56  ;;  %2860 = vmatprep.mubr.msk.bf16.mxu1 %vm3245_vm5, %v3244_v29 }
 0xb31   :  { %2858 = vmatprep.subr.bf16.mxu1 %v3244_v29  ;;  %2865 = vmatpush3.bf16.msra.mxu0 %v3368_v30 }
 0xb32   :  { %2866 = vmatprep.subr.bf16.mxu0 %v3244_v29  ;;  %2868 = vmatprep.mubr.msk.bf16.mxu0 %vm3245_vm5, %v3244_v29 }
 0xb34   :  { %2859 = vmatpush3.bf16.msra.mxu1 %v3578_v58 }
 0xb35   :  { %2872 = vmatprep.subr.bf16.mxu1 %v3244_v29  ;;  %2867 = vmatpush3.bf16.msra.mxu0 %v3377_v31 }
 0xb36   :  { %2888 = vmatprep.subr.bf16.mxu0 %v3244_v29 }
 0xb3a   :  { %v1164_v18 = vpop.permute.xlu1 %1163 }
 0xb3b   :  { %2861 = vmatmul.mubr.msk.bf16.vlgmr.msra.gmra.mrb[20].mxu1 %vm200_vm6, %v1164_v18 }
 0xb3c   :  { %2873 = vmatpush3.bf16.msra.mxu1 %v3391_v36  ;;  %2876 = vmatprep.mubr.msk.bf16.mxu1 %vm3245_vm5, %v3244_v29 }
 0xb3d   :  { %2874 = vmatprep.subr.bf16.mxu1 %v3244_v29 }
 0xb40   :  { %2875 = vmatpush3.bf16.msra.mxu1 %v3398_v38 }
 0xb41   :  { %2880 = vmatprep.subr.bf16.mxu1 %v3244_v29 }
 0xbf6   :  { %v982_v20 = vpop.f32.mrb[16].mxu1 }
 0xbf7   :  { %v988_v21 = vadd.f32 %v982_v20, %v144_v19  ;;  %v2830_v22 = vpop.f32.mrb[17].mxu1 }
 0xbf8   :  { %v985_v23 = vpop.f32.mrb[18].mxu1 }
 0xbf9   :  { %v989_v25 = vmul.f32 %v988_v21, %v3351_v14  ;;  %v2831_v35 = vpop.f32.mrb[19].mxu1 }
 0xbfb   :  { %3164 = vtanh.f32 %v989_v25 }
 0xc02   :  { %v1092_v41 = vpop.f32.mrb[24].mxu0 }
 0xc03   :  { %v3043_v42 = vadd.f32 %v3417_v46, %v1092_v41  ;;  %v2846_v43 = vpop.f32.mrb[25].mxu0 }
 0xc04   :  { %v1095_v3 = vpop.f32.mrb[26].mxu0 }
 0xc05   :  { %v3165_v45 = vpop.eup %3164  ;;  %v1099_v47 = vmul.f32 %v3043_v42, %v3351_v14  ;;  %v2847_v48 = vpop.f32.mrb[27].mxu0 }
 0xc06   :  { %v991_v50 = vmul.f32 0.5, %v3165_v45 }
 0xc07   :  { %3166 = vtanh.f32 %v1099_v47 }
 0xc08   :  { %v992_v11 = vadd.f32 0.5, %v991_v50 }
 0xc0a   :  { %v993_v27 = vsel %vm3338_vm4, %v3165_v45, %v992_v11 }
 0xc0b   :  { %996 = vrot.lane.b32.xlu0 %v993_v27, %s3242_s24  ;;  %v994_v40 = vmul.f32 %v993_v27, %v3618_v57 }
 0xc0e   :  { %v1202_v6 = vpop.f32.mrb[20].mxu1 }
 0xc0f   :  { %v3044_v51 = vadd.f32 %v3518_v49, %v1202_v6  ;;  %v2862_v52 = vpop.f32.mrb[21].mxu1 }
 0xc10   :  { %v1205_v53 = vpop.f32.mrb[22].mxu1 }
 0xc11   :  { %v3167_v12 = vpop.eup %3166  ;;  %v1209_v54 = vmul.f32 %v3044_v51, %v3351_v14  ;;  %v2863_v55 = vpop.f32.mrb[23].mxu1 }
 0xc12   :  { %v1101_v59 = vmul.f32 0.5, %v3167_v12 }
 0xc13   :  { %3168 = vtanh.f32 %v1209_v54 }
 0xc14   :  { %v1102_v60 = vadd.f32 0.5, %v1101_v59 }
 0xc16   :  { %v1103_v61 = vsel %vm3338_vm4, %v3167_v12, %v1102_v60 }
 0xc17   :  { %1106 = vrot.lane.b32.xlu1 %v1103_v61, %s3242_s24  ;;  %v1104_v16 = vmul.f32 %v1103_v61, %v3622_v62 }
 0xc1d   :  { %v3169_v63 = vpop.eup %3168 }
 0xc1e   :  { %v1211_v0 = vmul.f32 0.5, %v3169_v63 }
 0xc20   :  { %v1212_v1 = vadd.f32 0.5, %v1211_v0 }
 0xc22   :  { %v1213_v2 = vsel %vm3338_vm4, %v3169_v63, %v1212_v1 }
 0xc23   :  { %1216 = vrot.lane.b32.xlu0 %v1213_v2, %s3242_s24  ;;  %v1214_v20 = vmul.f32 %v1213_v2, %v3627_v24 }
 0xc7d   :  { %v997_v44 = vpop.permute.xlu0 %996 }
 0xc7e   :  { %v999_v4 = vmul.f32 %v997_v44, %v993_v27 }
 0xc80   :  { %1001 = vrot.lane.b32.xlu1 %v999_v4, %s3243_s25 }
 0xc89   :  { %v1107_v5 = vpop.permute.xlu1 %1106 }
 0xc8a   :  { %v1109_v7 = vmul.f32 %v1107_v5, %v1103_v61 }
 0xc8c   :  { %1111 = vrot.lane.b32.xlu0 %v1109_v7, %s3243_s25 }
 0xc95   :  { %v1217_v8 = vpop.permute.xlu0 %1216 }
 0xc96   :  { %v1219_v9 = vmul.f32 %v1217_v8, %v1213_v2 }
 0xc98   :  { %1221 = vrot.lane.b32.xlu1 %v1219_v9, %s3243_s25 }
 0xcf2   :  { %v1002_v13 = vpop.permute.xlu1 %1001 }
 0xcf3   :  { %v3690_v15 = vadd.f32 %v1002_v13, %v994_v40 }
 0xcf5   :  { %3170 = vtanh.f32 %v3690_v15 }
 0xcfe   :  { %v1112_v17 = vpop.permute.xlu0 %1111 }
 0xcff   :  { %v3171_v18 = vpop.eup %3170  ;;  %v3694_v19 = vadd.f32 %v1112_v17, %v1104_v16 }
 0xd00   :  { %1007 = vrot.lane.b32.xlu0 %v3171_v18, %s3242_s24 }
 0xd01   :  { %3172 = vtanh.f32 %v3694_v19 }
 0xd0a   :  { %v1222_v21 = vpop.permute.xlu1 %1221 }
 0xd0b   :  { %v3173_v22 = vpop.eup %3172  ;;  %v3699_v57 = vadd.f32 %v1222_v21, %v1214_v20 }
 0xd0c   :  { %1117 = vrot.lane.b32.xlu1 %v3173_v22, %s3242_s24 }
 0xd0d   :  { %3174 = vtanh.f32 %v3699_v57 }
 0xd17   :  { %v3175_v23 = vpop.eup %3174 }
 0xd18   :  { %1227 = vrot.lane.b32.xlu0 %v3175_v23, %s3242_s24 }
 0xd72   :  { %v1008_v62 = vpop.permute.xlu0 %1007 }
 0xd73   :  { %v1010_v25 = vmul.f32 %v1008_v62, %v993_v27 }
 0xd75   :  { %v1011_v35 = vpack.c.bf16 %v1010_v25, %v1010_v25 }
 0xd77   :  { %1233 = vrot.lane.b32.xlu1 %v1011_v35, %s3243_s25 }
 0xd7e   :  { %v1118_v41 = vpop.permute.xlu1 %1117 }
 0xd7f   :  { %v1120_v42 = vmul.f32 %v1118_v41, %v1103_v61 }
 0xd81   :  { %v1121_v43 = vpack.c.bf16 %v1120_v42, %v1120_v42 }
 0xd83   :  { %1343 = vrot.lane.b32.xlu0 %v1121_v43, %s3243_s25 }
 0xd8a   :  { %v1228_v24 = vpop.permute.xlu0 %1227 }
 0xd8b   :  { %v1230_v3 = vmul.f32 %v1228_v24, %v1213_v2 }
 0xd8d   :  { %v1231_v45 = vpack.c.bf16 %v1230_v3, %v1230_v3 }
 0xd8f   :  { %1453 = vrot.lane.b32.xlu1 %v1231_v45, %s3243_s25 }
 0xde9   :  { %v1234_v47 = vpop.permute.xlu1 %1233 }
 0xdea   :  { %2869 = vmatmul.mubr.msk.bf16.vlgmr.msra.gmra.mrb[28].mxu0 %vm200_vm6, %v1234_v47  ;;  %2877 = vmatmul.mubr.msk.bf16.vlgmr.msra.gmra.mrb[24].mxu1 %vm200_vm6, %v1234_v47 }
 0xdeb   :  { %2881 = vmatpush3.bf16.msra.mxu1 %v3467_v33  ;;  %2889 = vmatpush3.bf16.msra.mxu0 %v3472_v34 }
 0xdec   :  { %2882 = vmatprep.subr.bf16.mxu1 %v3244_v29  ;;  %2890 = vmatprep.subr.bf16.mxu0 %v3244_v29 }
 0xded   :  { %2884 = vmatprep.mubr.msk.bf16.mxu1 %vm3245_vm5, %v3244_v29  ;;  %2892 = vmatprep.mubr.msk.bf16.mxu0 %vm3245_vm5, %v3244_v29 }
 0xdef   :  { %2883 = vmatpush3.bf16.msra.mxu1 %v3486_v39  ;;  %2891 = vmatpush3.bf16.msra.mxu0 %v3481_v37 }
 0xdf0   :  { %2896 = vmatprep.subr.bf16.mxu0 %v3244_v29  ;;  %2904 = vmatprep.subr.bf16.mxu1 %v3244_v29 }
 0xdf5   :  { %v1344_v48 = vpop.permute.xlu0 %1343 }
 0xdf6   :  { %2885 = vmatmul.mubr.msk.bf16.vlgmr.msra.gmra.mrb[24].mxu1 %vm200_vm6, %v1344_v48  ;;  %2893 = vmatmul.mubr.msk.bf16.vlgmr.msra.gmra.mrb[32].mxu0 %vm200_vm6, %v1344_v48 }
 0xdf7   :  { %2897 = vmatpush3.bf16.msra.mxu0 %v3570_v56  ;;  %2900 = vmatprep.mubr.msk.bf16.mxu0 %vm3245_vm5, %v3244_v29 }
 0xdf8   :  { %2898 = vmatprep.subr.bf16.mxu0 %v3244_v29  ;;  %2905 = vmatpush3.bf16.msra.mxu1 %v3368_v30  ;;  %v3745_v30 = vld [vmem:[%s4054_s3] ss:$0 sm:$0xff] }
 0xdf9   :  { %2906 = vmatprep.subr.bf16.mxu1 %v3244_v29  ;;  %2908 = vmatprep.mubr.msk.bf16.mxu1 %vm3245_vm5, %v3244_v29 }
 0xdfb   :  { %2899 = vmatpush3.bf16.msra.mxu0 %v3578_v58 }
 0xdfc   :  { %2912 = vmatprep.subr.bf16.mxu0 %v3244_v29  ;;  %2907 = vmatpush3.bf16.msra.mxu1 %v3377_v31  ;;  %v147_v31 = vadd.f32 %v3745_v30, %v3462_v32 }
 0xdfd   :  { %2928 = vmatprep.subr.bf16.mxu1 %v3244_v29 }
 0xe01   :  { %v1454_v50 = vpop.permute.xlu1 %1453 }
 0xe02   :  { %2901 = vmatmul.mubr.msk.bf16.vlgmr.msra.gmra.mrb[32].mxu0 %vm200_vm6, %v1454_v50 }
 0xe03   :  { %2913 = vmatpush3.bf16.msra.mxu0 %v3391_v36  ;;  %2916 = vmatprep.mubr.msk.bf16.mxu0 %vm3245_vm5, %v3244_v29 }
 0xe04   :  { %2914 = vmatprep.subr.bf16.mxu0 %v3244_v29 }
 0xe07   :  { %2915 = vmatpush3.bf16.msra.mxu0 %v3398_v38 }
 0xe08   :  { %2920 = vmatprep.subr.bf16.mxu0 %v3244_v29 }
 0xebd   :  { %v1272_v11 = vpop.f32.mrb[28].mxu0 }
 0xebe   :  { %v1278_v27 = vadd.f32 %v1272_v11, %v147_v31  ;;  %v2870_v36 = vpop.f32.mrb[29].mxu0 }
 0xebf   :  { %v1275_v6 = vpop.f32.mrb[30].mxu0 }
 0xec0   :  { %v1279_v51 = vmul.f32 %v1278_v27, %v3351_v14  ;;  %v2871_v52 = vpop.f32.mrb[31].mxu0 }
 0xec2   :  { %3176 = vtanh.f32 %v1279_v51 }
 0xec9   :  { %v1382_v53 = vpop.f32.mrb[24].mxu1 }
 0xeca   :  { %v3045_v38 = vadd.f32 %v3417_v46, %v1382_v53  ;;  %v2886_v12 = vpop.f32.mrb[25].mxu1 }
 0xecb   :  { %v1385_v54 = vpop.f32.mrb[26].mxu1  ;;  %v3829_v12 = vld [vmem:[%s4056_s4 + $0x8] sm:$0xff]  }
 0xecc   :  { %v3177_v55 = vpop.eup %3176  ;;  %v1389_v59 = vmul.f32 %v3045_v38, %v3351_v14  ;;  %v2887_v60 = vpop.f32.mrb[27].mxu1  ;;  %v3820_v38 = vld [vmem:[%s4056_s4] sm:$0xff]   ;;  %v152_v54 = vadd.f32 %v3745_v30, %v3456_v26 }
 0xecd   :  { %v1281_v61 = vmul.f32 0.5, %v3177_v55 }
 0xece   :  { %3178 = vtanh.f32 %v1389_v59 }
 0xecf   :  { %v1282_v32 = vadd.f32 0.5, %v1281_v61 }
 0xed1   :  { %v1283_v63 = vsel %vm3338_vm4, %v3177_v55, %v1282_v32 }
 0xed2   :  { %1286 = vrot.lane.b32.xlu0 %v1283_v63, %s3242_s24  ;;  %v1284_v25 = vmul.f32 %v1283_v63, %v3690_v15 }
 0xed5   :  { %v1492_v0 = vpop.f32.mrb[32].mxu0 }
 0xed6   :  { %v3046_v1 = vadd.f32 %v3518_v49, %v1492_v0  ;;  %v2902_v2 = vpop.f32.mrb[33].mxu0 }
 0xed7   :  { %v1495_v44 = vpop.f32.mrb[34].mxu0 }
 0xed8   :  { %v3179_v46 = vpop.eup %3178  ;;  %v1499_v4 = vmul.f32 %v3046_v1, %v3351_v14  ;;  %v2903_v5 = vpop.f32.mrb[35].mxu0  ;;  %v3839_v1 = vld [vmem:[%s4057_s6] ss:$0 sm:$0xff] }
 0xed9   :  { %v1391_v7 = vmul.f32 0.5, %v3179_v46 }
 0xeda   :  { %3180 = vtanh.f32 %v1499_v4 }
 0xedb   :  { %v1392_v8 = vadd.f32 0.5, %v1391_v7 }
 0xedd   :  { %v1393_v9 = vsel %vm3338_vm4, %v3179_v46, %v1392_v8 }
 0xede   :  { %1396 = vrot.lane.b32.xlu1 %v1393_v9, %s3242_s24  ;;  %v1394_v42 = vmul.f32 %v1393_v9, %v3694_v19 }
 0xee4   :  { %v3181_v40 = vpop.eup %3180 }
 0xee5   :  { %v1501_v13 = vmul.f32 0.5, %v3181_v40 }
 0xee7   :  { %v1502_v16 = vadd.f32 0.5, %v1501_v13 }
 0xee9   :  { %v1503_v17 = vsel %vm3338_vm4, %v3181_v40, %v1502_v16 }
 0xeea   :  { %1506 = vrot.lane.b32.xlu0 %v1503_v17, %s3242_s24  ;;  %v1504_v45 = vmul.f32 %v1503_v17, %v3699_v57 }
 0xf44   :  { %v1287_v18 = vpop.permute.xlu0 %1286 }
 0xf45   :  { %v1289_v20 = vmul.f32 %v1287_v18, %v1283_v63 }
 0xf47   :  { %1291 = vrot.lane.b32.xlu1 %v1289_v20, %s3243_s25 }
 0xf50   :  { %v1397_v21 = vpop.permute.xlu1 %1396 }
 0xf51   :  { %v1399_v22 = vmul.f32 %v1397_v21, %v1393_v9 }
 0xf53   :  { %1401 = vrot.lane.b32.xlu0 %v1399_v22, %s3243_s25 }
 0xf5c   :  { %v1507_v23 = vpop.permute.xlu0 %1506 }
 0xf5d   :  { %v1509_v62 = vmul.f32 %v1507_v23, %v1503_v17 }
 0xf5f   :  { %1511 = vrot.lane.b32.xlu1 %v1509_v62, %s3243_s25 }
 0xfb9   :  { %v1292_v35 = vpop.permute.xlu1 %1291 }
 0xfba   :  { %v3767_v41 = vadd.f32 %v1292_v35, %v1284_v25 }
 0xfbc   :  { %3182 = vtanh.f32 %v3767_v41 }
 0xfc5   :  { %v1402_v43 = vpop.permute.xlu0 %1401 }
 0xfc6   :  { %v3183_v24 = vpop.eup %3182  ;;  %v3771_v3 = vadd.f32 %v1402_v43, %v1394_v42 }
 0xfc7   :  { %1297 = vrot.lane.b32.xlu0 %v3183_v24, %s3242_s24 }
 0xfc8   :  { %3184 = vtanh.f32 %v3771_v3 }
 0xfd1   :  { %v1512_v47 = vpop.permute.xlu1 %1511 }
 0xfd2   :  { %v3185_v48 = vpop.eup %3184  ;;  %v3776_v15 = vadd.f32 %v1512_v47, %v1504_v45 }
 0xfd3   :  { %1407 = vrot.lane.b32.xlu1 %v3185_v48, %s3242_s24 }
 0xfd4   :  { %3186 = vtanh.f32 %v3776_v15 }
 0xfde   :  { %v3187_v50 = vpop.eup %3186 }
 0xfdf   :  { %1517 = vrot.lane.b32.xlu0 %v3187_v50, %s3242_s24 }
0x1039   :  { %v1298_v19 = vpop.permute.xlu0 %1297 }
0x103a   :  { %v1300_v31 = vmul.f32 %v1298_v19, %v1283_v63 }
0x103c   :  { %v1301_v11 = vpack.c.bf16 %v1300_v31, %v1300_v31 }
0x103e   :  { %1523 = vrot.lane.b32.xlu1 %v1301_v11, %s3243_s25 }
0x1045   :  { %v1408_v27 = vpop.permute.xlu1 %1407 }
0x1046   :  { %v1410_v36 = vmul.f32 %v1408_v27, %v1393_v9 }
0x1048   :  { %v1411_v6 = vpack.c.bf16 %v1410_v36, %v1410_v36 }
0x104a   :  { %1633 = vrot.lane.b32.xlu0 %v1411_v6, %s3243_s25 }
0x1051   :  { %v1518_v57 = vpop.permute.xlu0 %1517 }
0x1052   :  { %v1520_v51 = vmul.f32 %v1518_v57, %v1503_v17 }
0x1054   :  { %v1521_v52 = vpack.c.bf16 %v1520_v51, %v1520_v51 }
0x1056   :  { %1743 = vrot.lane.b32.xlu1 %v1521_v52, %s3243_s25 }
0x10b0   :  { %v1524_v53 = vpop.permute.xlu1 %1523 }
0x10b1   :  { %2909 = vmatmul.mubr.msk.bf16.vlgmr.msra.gmra.mrb[28].mxu1 %vm200_vm6, %v1524_v53  ;;  %2917 = vmatmul.mubr.msk.bf16.vlgmr.msra.gmra.mrb[36].mxu0 %vm200_vm6, %v1524_v53 }
0x10b2   :  { %2921 = vmatpush3.bf16.msra.mxu0 %v3467_v33  ;;  %2929 = vmatpush3.bf16.msra.mxu1 %v3472_v34  ;;  %v3229_v34 = vld [vmem:[%s4055_s2] sm:$0xff]  }
0x10b3   :  { %2922 = vmatprep.subr.bf16.mxu0 %v3244_v29  ;;  %2930 = vmatprep.subr.bf16.mxu1 %v3244_v29 }
0x10b4   :  { %2924 = vmatprep.mubr.msk.bf16.mxu0 %vm3245_vm5, %v3244_v29  ;;  %2932 = vmatprep.mubr.msk.bf16.mxu1 %vm3245_vm5, %v3244_v29 }
0x10b6   :  { %2923 = vmatpush3.bf16.msra.mxu0 %v3486_v39  ;;  %2931 = vmatpush3.bf16.msra.mxu1 %v3481_v37  ;;  %v3230_v37 = vld [vmem:[%s4055_s2 + $0x8] sm:$0xff]  }
0x10b7   :  { %2936 = vmatprep.subr.bf16.mxu1 %v3244_v29  ;;  %2944 = vmatprep.subr.bf16.mxu0 %v3244_v29 }
0x10bc   :  { %v1634_v33 = vpop.permute.xlu0 %1633 }
0x10bd   :  { %2925 = vmatmul.mubr.msk.bf16.vlgmr.msra.gmra.mrb[36].mxu0 %vm200_vm6, %v1634_v33  ;;  %2933 = vmatmul.mubr.msk.bf16.vlgmr.msra.gmra.mrb[32].mxu1 %vm200_vm6, %v1634_v33 }
0x10be   :  { %2937 = vmatpush3.bf16.msra.mxu1 %v3570_v56  ;;  %2940 = vmatprep.mubr.msk.bf16.mxu1 %vm3245_vm5, %v3244_v29 }
0x10bf   :  { %2938 = vmatprep.subr.bf16.mxu1 %v3244_v29  ;;  %2945 = vmatpush3.bf16.msra.mxu0 %v3229_v34 }
0x10c0   :  { %2946 = vmatprep.subr.bf16.mxu0 %v3244_v29  ;;  %2948 = vmatprep.mubr.msk.bf16.mxu0 %vm3245_vm5, %v3244_v29 }
0x10c2   :  { %2939 = vmatpush3.bf16.msra.mxu1 %v3578_v58 }
0x10c3   :  { %2952 = vmatprep.subr.bf16.mxu1 %v3244_v29  ;;  %2947 = vmatpush3.bf16.msra.mxu0 %v3230_v37 }
0x10c4   :  { %2968 = vmatprep.subr.bf16.mxu0 %v3244_v29 }
0x10c8   :  { %v1744_v39 = vpop.permute.xlu1 %1743 }
0x10c9   :  { %2941 = vmatmul.mubr.msk.bf16.vlgmr.msra.gmra.mrb[32].mxu1 %vm200_vm6, %v1744_v39 }
0x10ca   :  { %2953 = vmatpush3.bf16.msra.mxu1 %v3820_v38  ;;  %2956 = vmatprep.mubr.msk.bf16.mxu1 %vm3245_vm5, %v3244_v29 }
0x10cb   :  { %2954 = vmatprep.subr.bf16.mxu1 %v3244_v29 }
0x10ce   :  { %2955 = vmatpush3.bf16.msra.mxu1 %v3829_v12 }
0x10cf   :  { %2960 = vmatprep.subr.bf16.mxu1 %v3244_v29 }
0x1184   :  { %v1562_v55 = vpop.f32.mrb[28].mxu1 }
0x1185   :  { %v1568_v59 = vadd.f32 %v1562_v55, %v152_v54  ;;  %v2910_v60 = vpop.f32.mrb[29].mxu1 }
0x1186   :  { %v1565_v61 = vpop.f32.mrb[30].mxu1 }
0x1187   :  { %v1569_v32 = vmul.f32 %v1568_v59, %v3351_v14  ;;  %v2911_v63 = vpop.f32.mrb[31].mxu1 }
0x1188   :  { %v3886_v63 = vld [vmem:[%s4058_s7] sm:$0xff]  }
0x1189   :  { %3188 = vtanh.f32 %v1569_v32  ;;  %v3880_v32 = vld [vmem:[%s4059_s5] sm:$0xff]  }
0x1190   :  { %v1672_v0 = vpop.f32.mrb[36].mxu0 }
0x1191   :  { %v3047_v2 = vadd.f32 %v3839_v1, %v1672_v0  ;;  %v2926_v44 = vpop.f32.mrb[37].mxu0  ;;  %v3898_v0 = vld [vmem:[%s4059_s5 + $0x8] sm:$0xff]  }
0x1192   :  { %v1675_v46 = vpop.f32.mrb[38].mxu0 }
0x1193   :  { %v3189_v4 = vpop.eup %3188  ;;  %v1679_v26 = vmul.f32 %v3047_v2, %v3351_v14  ;;  %v2927_v5 = vpop.f32.mrb[39].mxu0  ;;  %v3904_v2 = vld [vmem:[%s4058_s7 + $0x8] sm:$0xff]  }
0x1194   :  { %v1571_v7 = vmul.f32 0.5, %v3189_v4 }
0x1195   :  { %3190 = vtanh.f32 %v1679_v26 }
0x1196   :  { %v1572_v8 = vadd.f32 0.5, %v1571_v7 }
0x1198   :  { %v1573_v9 = vsel %vm3338_vm4, %v3189_v4, %v1572_v8 }
0x1199   :  { %1576 = vrot.lane.b32.xlu0 %v1573_v9, %s3242_s24  ;;  %v1574_v19 = vmul.f32 %v1573_v9, %v3767_v41 }
0x119c   :  { %v1782_v40 = vpop.f32.mrb[32].mxu1 }
0x119d   :  { %v3048_v13 = vadd.f32 %v3518_v49, %v1782_v40  ;;  %v2942_v16 = vpop.f32.mrb[33].mxu1 }
0x119e   :  { %v1785_v17 = vpop.f32.mrb[34].mxu1 }
0x119f   :  { %v3191_v18 = vpop.eup %3190  ;;  %v1789_v20 = vmul.f32 %v3048_v13, %v3351_v14  ;;  %v2943_v21 = vpop.f32.mrb[35].mxu1 }
0x11a0   :  { %v1681_v22 = vmul.f32 0.5, %v3191_v18  ;;  %v3941_v21 = vld [vmem:[%s4060_s9] ss:$0 sm:$0xff] }
0x11a1   :  { %3192 = vtanh.f32 %v1789_v20 }
0x11a2   :  { %v1682_v23 = vadd.f32 0.5, %v1681_v22 }
0x11a4   :  { %v1683_v62 = vsel %vm3338_vm4, %v3191_v18, %v1682_v23 }
0x11a5   :  { %1686 = vrot.lane.b32.xlu1 %v1683_v62, %s3242_s24  ;;  %v1684_v27 = vmul.f32 %v1683_v62, %v3771_v3 }
0x11ab   :  { %v3193_v25 = vpop.eup %3192 }
0x11ac   :  { %v1791_v35 = vmul.f32 0.5, %v3193_v25 }
0x11ae   :  { %v1792_v42 = vadd.f32 0.5, %v1791_v35 }
0x11b0   :  { %v1793_v49 = vsel %vm3338_vm4, %v3193_v25, %v1792_v42 }
0x11b1   :  { %1796 = vrot.lane.b32.xlu0 %v1793_v49, %s3242_s24  ;;  %v1794_v51 = vmul.f32 %v1793_v49, %v3776_v15 }
0x120b   :  { %v1577_v43 = vpop.permute.xlu0 %1576 }
0x120c   :  { %v1579_v24 = vmul.f32 %v1577_v43, %v1573_v9 }
0x120e   :  { %1581 = vrot.lane.b32.xlu1 %v1579_v24, %s3243_s25 }
0x1217   :  { %v1687_v45 = vpop.permute.xlu1 %1686 }
0x1218   :  { %v1689_v47 = vmul.f32 %v1687_v45, %v1683_v62 }
0x121a   :  { %1691 = vrot.lane.b32.xlu0 %v1689_v47, %s3243_s25 }
0x1223   :  { %v1797_v48 = vpop.permute.xlu0 %1796 }
0x1224   :  { %v1799_v50 = vmul.f32 %v1797_v48, %v1793_v49 }
0x1226   :  { %1801 = vrot.lane.b32.xlu1 %v1799_v50, %s3243_s25 }
0x1280   :  { %v1582_v31 = vpop.permute.xlu1 %1581 }
0x1281   :  { %v3858_v11 = vadd.f32 %v1582_v31, %v1574_v19 }
0x1283   :  { %3194 = vtanh.f32 %v3858_v11 }
0x128c   :  { %v1692_v36 = vpop.permute.xlu0 %1691 }
0x128d   :  { %v3195_v6 = vpop.eup %3194  ;;  %v3862_v57 = vadd.f32 %v1692_v36, %v1684_v27 }
0x128e   :  { %1587 = vrot.lane.b32.xlu0 %v3195_v6, %s3242_s24 }
0x128f   :  { %3196 = vtanh.f32 %v3862_v57 }
0x1298   :  { %v1802_v52 = vpop.permute.xlu1 %1801 }
0x1299   :  { %v3197_v53 = vpop.eup %3196  ;;  %v3867_v41 = vadd.f32 %v1802_v52, %v1794_v51 }
0x129a   :  { %1697 = vrot.lane.b32.xlu1 %v3197_v53, %s3242_s24 }
0x129b   :  { %3198 = vtanh.f32 %v3867_v41 }
0x12a5   :  { %v3199_v33 = vpop.eup %3198 }
0x12a6   :  { %1807 = vrot.lane.b32.xlu0 %v3199_v33, %s3242_s24 }
0x1300   :  { %v1588_v3 = vpop.permute.xlu0 %1587 }
0x1301   :  { %v1590_v34 = vmul.f32 %v1588_v3, %v1573_v9 }
0x1303   :  { %v1591_v37 = vpack.c.bf16 %v1590_v34, %v1590_v34 }
0x1305   :  { %1813 = vrot.lane.b32.xlu1 %v1591_v37, %s3243_s25 }
0x130c   :  { %v1698_v39 = vpop.permute.xlu1 %1697 }
0x130d   :  { %v1700_v54 = vmul.f32 %v1698_v39, %v1683_v62 }
0x130f   :  { %v1701_v55 = vpack.c.bf16 %v1700_v54, %v1700_v54 }
0x1311   :  { %1923 = vrot.lane.b32.xlu0 %v1701_v55, %s3243_s25 }
0x1318   :  { %v1808_v15 = vpop.permute.xlu0 %1807 }
0x1319   :  { %v1810_v59 = vmul.f32 %v1808_v15, %v1793_v49 }
0x131b   :  { %v1811_v60 = vpack.c.bf16 %v1810_v59, %v1810_v59 }
0x131d   :  { %2033 = vrot.lane.b32.xlu1 %v1811_v60, %s3243_s25 }
0x1377   :  { %v1814_v61 = vpop.permute.xlu1 %1813 }
0x1378   :  { %2949 = vmatmul.mubr.msk.bf16.vlgmr.msra.gmra.mrb[40].mxu0 %vm200_vm6, %v1814_v61  ;;  %2957 = vmatmul.mubr.msk.bf16.vlgmr.msra.gmra.mrb[36].mxu1 %vm200_vm6, %v1814_v61 }
0x1379   :  { %2961 = vmatpush3.bf16.msra.mxu1 %v3880_v32  ;;  %2969 = vmatpush3.bf16.msra.mxu0 %v3886_v63 }
0x137a   :  { %2962 = vmatprep.subr.bf16.mxu1 %v3244_v29  ;;  %2970 = vmatprep.subr.bf16.mxu0 %v3244_v29 }
0x137b   :  { %2964 = vmatprep.mubr.msk.bf16.mxu1 %vm3245_vm5, %v3244_v29  ;;  %2972 = vmatprep.mubr.msk.bf16.mxu0 %vm3245_vm5, %v3244_v29 }
0x137d   :  { %2963 = vmatpush3.bf16.msra.mxu1 %v3898_v0  ;;  %2971 = vmatpush3.bf16.msra.mxu0 %v3904_v2 }
0x137e   :  { %2976 = vmatprep.subr.bf16.mxu0 %v3244_v29  ;;  %2984 = vmatprep.subr.bf16.mxu1 %v3244_v29 }
0x1383   :  { %v1924_v44 = vpop.permute.xlu0 %1923 }
0x1384   :  { %2965 = vmatmul.mubr.msk.bf16.vlgmr.msra.gmra.mrb[36].mxu1 %vm200_vm6, %v1924_v44  ;;  %2973 = vmatmul.mubr.msk.bf16.vlgmr.msra.gmra.mrb[44].mxu0 %vm200_vm6, %v1924_v44 }
0x1385   :  { %2977 = vmatpush3.bf16.msra.mxu0 %v3570_v56  ;;  %2980 = vmatprep.mubr.msk.bf16.mxu0 %vm3245_vm5, %v3244_v29 }
0x1386   :  { %2978 = vmatprep.subr.bf16.mxu0 %v3244_v29  ;;  %2985 = vmatpush3.bf16.msra.mxu1 %v3820_v38 }
0x1387   :  { %2986 = vmatprep.subr.bf16.mxu1 %v3244_v29  ;;  %2988 = vmatprep.mubr.msk.bf16.mxu1 %vm3245_vm5, %v3244_v29 }
0x1389   :  { %2979 = vmatpush3.bf16.msra.mxu0 %v3578_v58  ;;  %v155_v58 = vadd.f32 %v3745_v30, %v3460_v28 }
0x138a   :  { %2987 = vmatpush3.bf16.msra.mxu1 %v3829_v12  ;;  %3000 = vmatprep.subr.bf16.mxu0 %v3244_v29 }
0x138b   :  { %2992 = vmatprep.subr.bf16.mxu1 %v3244_v29 }
0x138f   :  { %v2034_v56 = vpop.permute.xlu1 %2033 }
0x1390   :  { %2981 = vmatmul.mubr.msk.bf16.vlgmr.msra.gmra.mrb[44].mxu0 %vm200_vm6, %v2034_v56 }
0x1391   :  { %3001 = vmatpush3.bf16.msra.mxu0 %v3886_v63  ;;  %3004 = vmatprep.mubr.msk.bf16.mxu0 %vm3245_vm5, %v3244_v29 }
0x1392   :  { %3002 = vmatprep.subr.bf16.mxu0 %v3244_v29 }
0x1395   :  { %3003 = vmatpush3.bf16.msra.mxu0 %v3904_v2 }
0x1396   :  { %3008 = vmatprep.subr.bf16.mxu0 %v3244_v29 }
0x144b   :  { %v1852_v38 = vpop.f32.mrb[40].mxu0 }
0x144c   :  { %v1858_v12 = vadd.f32 %v1852_v38, %v155_v58  ;;  %v2950_v46 = vpop.f32.mrb[41].mxu0 }
0x144d   :  { %v1855_v4 = vpop.f32.mrb[42].mxu0 }
0x144e   :  { %v1859_v26 = vmul.f32 %v1858_v12, %v3351_v14  ;;  %v2951_v5 = vpop.f32.mrb[43].mxu0 }
0x1450   :  { %3200 = vtanh.f32 %v1859_v26  ;;  %v3981_v26 = vld [vmem:[%s4061_s8] sm:$0xff]  }
0x1457   :  { %v1962_v7 = vpop.f32.mrb[36].mxu1 }
0x1458   :  { %v3049_v8 = vadd.f32 %v3839_v1, %v1962_v7  ;;  %v2966_v9 = vpop.f32.mrb[37].mxu1 }
0x1459   :  { %v1965_v40 = vpop.f32.mrb[38].mxu1 }
0x145a   :  { %v3201_v13 = vpop.eup %3200  ;;  %v1969_v16 = vmul.f32 %v3049_v8, %v3351_v14  ;;  %v2967_v17 = vpop.f32.mrb[39].mxu1 }
0x145b   :  { %v1861_v18 = vmul.f32 0.5, %v3201_v13 }
0x145c   :  { %3202 = vtanh.f32 %v1969_v16 }
0x145d   :  { %v1862_v28 = vadd.f32 0.5, %v1861_v18 }
0x145f   :  { %v1863_v30 = vsel %vm3338_vm4, %v3201_v13, %v1862_v28 }
0x1460   :  { %1866 = vrot.lane.b32.xlu0 %v1863_v30, %s3242_s24  ;;  %v1864_v52 = vmul.f32 %v1863_v30, %v3858_v11 }
0x1463   :  { %v2072_v20 = vpop.f32.mrb[44].mxu0 }
0x1464   :  { %v3050_v22 = vadd.f32 %v3941_v21, %v2072_v20  ;;  %v2982_v23 = vpop.f32.mrb[45].mxu0 }
0x1465   :  { %v2075_v62 = vpop.f32.mrb[46].mxu0 }
0x1466   :  { %v3203_v25 = vpop.eup %3202  ;;  %v2079_v35 = vmul.f32 %v3050_v22, %v3351_v14  ;;  %v2983_v42 = vpop.f32.mrb[47].mxu0 }
0x1467   :  { %v1971_v49 = vmul.f32 0.5, %v3203_v25 }
0x1468   :  { %3204 = vtanh.f32 %v2079_v35 }
0x1469   :  { %v1972_v43 = vadd.f32 0.5, %v1971_v49 }
0x146b   :  { %v1973_v24 = vsel %vm3338_vm4, %v3203_v25, %v1972_v43 }
0x146c   :  { %1976 = vrot.lane.b32.xlu1 %v1973_v24, %s3242_s24  ;;  %v1974_v3 = vmul.f32 %v1973_v24, %v3862_v57 }
0x1472   :  { %v3205_v45 = vpop.eup %3204 }
0x1473   :  { %v2081_v47 = vmul.f32 0.5, %v3205_v45 }
0x1475   :  { %v2082_v48 = vadd.f32 0.5, %v2081_v47 }
0x1477   :  { %v2083_v50 = vsel %vm3338_vm4, %v3205_v45, %v2082_v48 }
0x1478   :  { %2086 = vrot.lane.b32.xlu0 %v2083_v50, %s3242_s24  ;;  %v2084_v54 = vmul.f32 %v2083_v50, %v3867_v41 }
0x14d2   :  { %v1867_v19 = vpop.permute.xlu0 %1866 }
0x14d3   :  { %v1869_v31 = vmul.f32 %v1867_v19, %v1863_v30 }
0x14d5   :  { %1871 = vrot.lane.b32.xlu1 %v1869_v31, %s3243_s25 }
0x14de   :  { %v1977_v27 = vpop.permute.xlu1 %1976 }
0x14df   :  { %v1979_v36 = vmul.f32 %v1977_v27, %v1973_v24 }
0x14e1   :  { %1981 = vrot.lane.b32.xlu0 %v1979_v36, %s3243_s25 }
0x14ea   :  { %v2087_v6 = vpop.permute.xlu0 %2086 }
0x14eb   :  { %v2089_v51 = vmul.f32 %v2087_v6, %v2083_v50 }
0x14ed   :  { %2091 = vrot.lane.b32.xlu1 %v2089_v51, %s3243_s25 }
0x1547   :  { %v1872_v53 = vpop.permute.xlu1 %1871 }
0x1548   :  { %v1874_v33 = vadd.f32 %v1872_v53, %v1864_v52 }
0x154a   :  { %3206 = vtanh.f32 %v1874_v33 }
0x1553   :  { %v1982_v34 = vpop.permute.xlu0 %1981 }
0x1554   :  { %v3207_v37 = vpop.eup %3206  ;;  %v3956_v39 = vadd.f32 %v1982_v34, %v1974_v3 }
0x1555   :  { %1877 = vrot.lane.b32.xlu0 %v3207_v37, %s3242_s24 }
0x1556   :  { %3208 = vtanh.f32 %v3956_v39 }
0x155f   :  { %v2092_v55 = vpop.permute.xlu1 %2091 }
0x1560   :  { %v3209_v15 = vpop.eup %3208  ;;  %v3961_v59 = vadd.f32 %v2092_v55, %v2084_v54 }
0x1561   :  { %1987 = vrot.lane.b32.xlu1 %v3209_v15, %s3242_s24 }
0x1562   :  { %3210 = vtanh.f32 %v3961_v59 }
0x156c   :  { %v3211_v11 = vpop.eup %3210 }
0x156d   :  { %2097 = vrot.lane.b32.xlu0 %v3211_v11, %s3242_s24 }
0x15c7   :  { %v1878_v57 = vpop.permute.xlu0 %1877 }
0x15c8   :  { %v1880_v60 = vmul.f32 %v1878_v57, %v1863_v30 }
0x15ca   :  { %v1881_v61 = vpack.c.bf16 %v1880_v60, %v1880_v60 }
0x15cc   :  { %2103 = vrot.lane.b32.xlu1 %v1881_v61, %s3243_s25 }
0x15d3   :  { %v1988_v44 = vpop.permute.xlu1 %1987 }
0x15d4   :  { %v1990_v56 = vmul.f32 %v1988_v44, %v1973_v24 }
0x15d6   :  { %v1991_v58 = vpack.c.bf16 %v1990_v56, %v1990_v56 }
0x15d8   :  { %2149 = vrot.lane.b32.xlu0 %v1991_v58, %s3243_s25 }
0x15df   :  { %v2098_v41 = vpop.permute.xlu0 %2097 }
0x15e0   :  { %v2100_v38 = vmul.f32 %v2098_v41, %v2083_v50 }
0x15e2   :  { %v2101_v12 = vpack.c.bf16 %v2100_v38, %v2100_v38 }
0x15e4   :  { %2259 = vrot.lane.b32.xlu1 %v2101_v12, %s3243_s25 }
0x163e   :  { %v2104_v46 = vpop.permute.xlu1 %2103 }
0x163f   :  { %2989 = vmatmul.mubr.msk.bf16.vlgmr.msra.gmra.mrb[40].mxu1 %vm200_vm6, %v2104_v46 }
0x1640   :  { %2993 = vmatpush3.bf16.msra.mxu1 %v3880_v32  ;;  %2996 = vmatprep.mubr.msk.bf16.mxu1 %vm3245_vm5, %v3244_v29  ;;  %v3240_v32 = vld [vmem:[%s4061_s8 + $0x8] sm:$0xff]  }
0x1641   :  { %2994 = vmatprep.subr.bf16.mxu1 %v3244_v29 }
0x1644   :  { %2995 = vmatpush3.bf16.msra.mxu1 %v3898_v0 }
0x1645   :  { %3016 = vmatprep.subr.bf16.mxu1 %v3244_v29 }
0x164a   :  { %v2150_v4 = vpop.permute.xlu0 %2149 }
0x164b   :  { %2997 = vmatmul.mubr.msk.bf16.vlgmr.msra.gmra.mrb[40].mxu1 %vm200_vm6, %v2150_v4  ;;  %3005 = vmatmul.mubr.msk.bf16.vlgmr.msra.gmra.mrb[48].mxu0 %vm200_vm6, %v2150_v4 }
0x164c   :  { %3009 = vmatpush3.bf16.msra.mxu0 %v3981_v26  ;;  %3012 = vmatprep.mubr.msk.bf16.mxu0 %vm3245_vm5, %v3244_v29 }
0x164d   :  { %3010 = vmatprep.subr.bf16.mxu0 %v3244_v29  ;;  %3017 = vmatpush3.bf16.msra.mxu1 %v3886_v63 }
0x164e   :  { %3018 = vmatprep.subr.bf16.mxu1 %v3244_v29  ;;  %3020 = vmatprep.mubr.msk.bf16.mxu1 %vm3245_vm5, %v3244_v29 }
0x1650   :  { %3011 = vmatpush3.bf16.msra.mxu0 %v3240_v32 }
0x1651   :  { %3019 = vmatpush3.bf16.msra.mxu1 %v3904_v2  ;;  %3032 = vmatprep.subr.bf16.mxu0 %v3244_v29 }
0x1652   :  { %3024 = vmatprep.subr.bf16.mxu1 %v3244_v29 }
0x1656   :  { %v2260_v0 = vpop.permute.xlu1 %2259 }
0x1657   :  { %3013 = vmatmul.mubr.msk.bf16.vlgmr.msra.gmra.mrb[48].mxu0 %vm200_vm6, %v2260_v0  ;;  %v19_v0 = vstv %s4063_s13 }
0x1658   :  { %3036 = vmatprep.mubr.msk.bf16.mxu0 %vm3245_vm5, %v3244_v29  ;;  %20 = vst [vmem:[#allocation2] sm:$0x1] %v19_v0 }
0x171e   :  { %v2188_v63 = vpop.f32.mrb[40].mxu1 }
0x171f   :  { %v3051_v5 = vadd.f32 %v3839_v1, %v2188_v63  ;;  %v2998_v7 = vpop.f32.mrb[41].mxu1 }
0x1720   :  { %v2191_v8 = vpop.f32.mrb[42].mxu1 }
0x1721   :  { %v2195_v9 = vmul.f32 %v3051_v5, %v3351_v14  ;;  %v2999_v40 = vpop.f32.mrb[43].mxu1 }
0x1723   :  { %3212 = vtanh.f32 %v2195_v9  ;;  %v2604_v9 = vld [vmem:[%s4065_s12] ss:$0 sm:$0xff] }
0x172a   :  { %v2298_v2 = vpop.f32.mrb[48].mxu0 }
0x172b   :  { %v3052_v13 = vadd.f32 %v3941_v21, %v2298_v2  ;;  %v3014_v16 = vpop.f32.mrb[49].mxu0 }
0x172c   :  { %v2301_v17 = vpop.f32.mrb[50].mxu0 }
0x172d   :  { %v3213_v18 = vpop.eup %3212  ;;  %v2305_v28 = vmul.f32 %v3052_v13, %v3351_v14  ;;  %v3015_v30 = vpop.f32.mrb[51].mxu0  ;;  %v2605_v17 = vld [vmem:[#allocation2] ss:$0 sm:$0xff] }
0x172e   :  { %v2197_v20 = vmul.f32 0.5, %v3213_v18 }
0x172f   :  { %3214 = vtanh.f32 %v2305_v28 }
0x1730   :  { %v2198_v22 = vadd.f32 0.5, %v2197_v20 }
0x1732   :  { %v2199_v1 = vsel %vm3338_vm4, %v3213_v18, %v2198_v22 }
0x1733   :  { %2202 = vrot.lane.b32.xlu0 %v2199_v1, %s3242_s24  ;;  %v2200_v45 = vmul.f32 %v2199_v1, %v3956_v39 }
0x1739   :  { %v3215_v23 = vpop.eup %3214 }
0x173a   :  { %v2307_v62 = vmul.f32 0.5, %v3215_v23 }
0x173c   :  { %v2308_v25 = vadd.f32 0.5, %v2307_v62 }
0x173e   :  { %v2309_v35 = vsel %vm3338_vm4, %v3215_v23, %v2308_v25 }
0x173f   :  { %2312 = vrot.lane.b32.xlu1 %v2309_v35, %s3242_s24  ;;  %v2310_v50 = vmul.f32 %v2309_v35, %v3961_v59 }
0x17a5   :  { %v2203_v42 = vpop.permute.xlu0 %2202 }
0x17a6   :  { %v2205_v49 = vmul.f32 %v2203_v42, %v2199_v1 }
0x17a8   :  { %2207 = vrot.lane.b32.xlu0 %v2205_v49, %s3243_s25 }
0x17b1   :  { %v2313_v43 = vpop.permute.xlu1 %2312 }
0x17b2   :  { %v2315_v24 = vmul.f32 %v2313_v43, %v2309_v35 }
0x17b4   :  { %2317 = vrot.lane.b32.xlu1 %v2315_v24, %s3243_s25 }
0x181a   :  { %v2208_v47 = vpop.permute.xlu0 %2207 }
0x181b   :  { %v2210_v48 = vadd.f32 %v2208_v47, %v2200_v45 }
0x181d   :  { %3216 = vtanh.f32 %v2210_v48 }
0x1826   :  { %v2318_v19 = vpop.permute.xlu1 %2317 }
0x1827   :  { %v3217_v31 = vpop.eup %3216  ;;  %v2320_v27 = vadd.f32 %v2318_v19, %v2310_v50 }
0x1828   :  { %2213 = vrot.lane.b32.xlu0 %v3217_v31, %s3242_s24 }
0x1829   :  { %3218 = vtanh.f32 %v2320_v27 }
0x1833   :  { %v3219_v36 = vpop.eup %3218 }
0x1834   :  { %2323 = vrot.lane.b32.xlu1 %v3219_v36, %s3242_s24 }
0x189a   :  { %v2214_v6 = vpop.permute.xlu0 %2213 }
0x189b   :  { %v2216_v51 = vmul.f32 %v2214_v6, %v2199_v1 }
0x189d   :  { %v2217_v52 = vpack.c.bf16 %v2216_v51, %v2216_v51 }
0x189f   :  { %2329 = vrot.lane.b32.xlu0 %v2217_v52, %s3243_s25 }
0x18a6   :  { %v2324_v53 = vpop.permute.xlu1 %2323 }
0x18a7   :  { %v2326_v33 = vmul.f32 %v2324_v53, %v2309_v35 }
0x18a9   :  { %v2327_v3 = vpack.c.bf16 %v2326_v33, %v2326_v33 }
0x18ab   :  { %2375 = vrot.lane.b32.xlu1 %v2327_v3, %s3243_s25 }
0x1911   :  { %v2330_v34 = vpop.permute.xlu0 %2329 }
0x1912   :  { %3021 = vmatmul.mubr.msk.bf16.vlgmr.msra.gmra.mrb[44].mxu1 %vm200_vm6, %v2330_v34 }
0x1913   :  { %3025 = vmatpush3.bf16.msra.mxu1 %v3981_v26  ;;  %3028 = vmatprep.mubr.msk.bf16.mxu1 %vm3245_vm5, %v3244_v29 }
0x1914   :  { %3026 = vmatprep.subr.bf16.mxu1 %v3244_v29 }
0x1917   :  { %3027 = vmatpush3.bf16.msra.mxu1 %v3240_v32 }
0x191d   :  { %v2376_v37 = vpop.permute.xlu1 %2375 }
0x191e   :  { %3029 = vmatmul.mubr.msk.bf16.vlgmr.msra.gmra.mrb[44].mxu1 %vm200_vm6, %v2376_v37 }
0x19f1   :  { %v2414_v39 = vpop.f32.mrb[44].mxu1 }
0x19f2   :  { %v3053_v54 = vadd.f32 %v3941_v21, %v2414_v39  ;;  %v3030_v55 = vpop.f32.mrb[45].mxu1 }
0x19f3   :  { %v2417_v15 = vpop.f32.mrb[46].mxu1 }
0x19f4   :  { %v2421_v59 = vmul.f32 %v3053_v54, %v3351_v14  ;;  %v3031_v11 = vpop.f32.mrb[47].mxu1  ;;  %v3126_v14 = vld [vmem:[%s4062_s10] sm:$0xff]  }
0x19f5   :  { %3033 = vmatpush3.bf16.msra.mxu0 %v3126_v14 }
0x19f6   :  { %3220 = vtanh.f32 %v2421_v59  ;;  %3034 = vmatprep.subr.bf16.mxu0 %v3244_v29  ;;  %v2600_v29 = vld [vmem:[%s4064_s11] ss:$0 sm:$0xff] }
0x19f9   :  { %3035 = vmatpush3.bf16.msra.mxu0 %v3127_v10 }
0x1a00   :  { %v3221_v57 = vpop.eup %3220 }
0x1a01   :  { %v2423_v60 = vmul.f32 0.5, %v3221_v57 }
0x1a03   :  { %v2424_v61 = vadd.f32 0.5, %v2423_v60 }
0x1a05   :  { %v2425_v44 = vsel %vm3338_vm4, %v3221_v57, %v2424_v61 }
0x1a06   :  { %2428 = vrot.lane.b32.xlu0 %v2425_v44, %s3242_s24  ;;  %v2426_v41 = vmul.f32 %v2425_v44, %v2320_v27 }
0x1a78   :  { %v2429_v56 = vpop.permute.xlu0 %2428 }
0x1a79   :  { %v2431_v58 = vmul.f32 %v2429_v56, %v2425_v44 }
0x1a7b   :  { %2433 = vrot.lane.b32.xlu1 %v2431_v58, %s3243_s25 }
0x1aed   :  { %v2434_v21 = vpop.permute.xlu1 %2433 }
0x1aee   :  { %v2436_v38 = vadd.f32 %v2434_v21, %v2426_v41 }
0x1af0   :  { %3222 = vtanh.f32 %v2436_v38 }
0x1afa   :  { %v3223_v12 = vpop.eup %3222 }
0x1afb   :  { %2439 = vrot.lane.b32.xlu0 %v3223_v12, %s3242_s24 }
0x1b6d   :  { %v2440_v46 = vpop.permute.xlu0 %2439 }
0x1b6e   :  { %v2442_v4 = vmul.f32 %v2440_v46, %v2425_v44 }
0x1b70   :  { %v2443_v26 = vpack.c.bf16 %v2442_v4, %v2442_v4 }
0x1b72   :  { %2456 = vrot.lane.b32.xlu1 %v2443_v26, %s3243_s25 }
0x1be4   :  { %v2457_v32 = vpop.permute.xlu1 %2456 }
0x1be5   :  { %3037 = vmatmul.mubr.msk.bf16.vlgmr.msra.gmra.mrb[52].mxu0 %vm200_vm6, %v2457_v32 }
0x1cb8   :  { %v2507_v63 = vpop.f32.mrb[52].mxu0 }
0x1cb9   :  { %v2508_v5 = vadd.f32 %v2600_v29, %v2507_v63  ;;  %v3038_v7 = vpop.f32.mrb[53].mxu0 }
0x1cba   :  { %v2510_v8 = vpop.f32.mrb[54].mxu0 }
0x1cbb   :  { %v2513_v40 = vmax.f32 %v2508_v5, 0.0  ;;  %v3039_v2 = vpop.f32.mrb[55].mxu0 }
0x1cbd   :  { %v2521_v13 = vmul.f32 %v2604_v9, %v2513_v40 }
0x1cbf   :  { %v2523_v16 = vsel %vm2522_vm7, %v2521_v13, 0.0 }
0x1cc0   :  { %2524 = vadd.xlane.f32.xlu0 %v2523_v16 }
0x1d4d   :  { %v2525_v18 = vpop.xlane.xlu0 %2524 }
0x1d4e   :  { %v2533_v28 = vadd.f32 %v2605_v17, %v2525_v18 }
0x1d50   :  { %v2606_v30 = vmul.f32 -1.442695, %v2533_v28 }
0x1d52   :  { %3224 = vpow2.f32 %v2606_v30 }
0x1d5c   :  { %v3225_v20 = vpop.eup %3224 }
0x1d5d   :  { %v2537_v22 = vadd.f32 1.0, %v3225_v20 }
0x1d5f   :  { %3226 = vrcp.f32 %v2537_v22 }
0x1d69   :  { %v3227_v1 = vpop.eup %3226 }
0x1d6a   :  { %2541 = vst.msk [vmem:[%s4066_s14] sm:$0xff] %vm2540_vm8, %v3227_v1 }

</bundles_post_ra>
